<compile_context>
chip_gen: v6e
topology: v6e:2x2x1
jax: 0.10.0
libtpu: 0.0.40
codegen_flags: <defaults>
</compile_context>

<pallas_src>
import functools

import jax
import jax.numpy as jnp
from jax.experimental import pallas as pl
from jax.experimental.pallas import tpu as pltpu

EPS = 1e-5
LANE = 128
VMEM_LIMIT = 32 * 1024 * 1024  # scoped-VMEM safe on v5e/v6e and on v7x (64 MiB phys)


def _round_up(x, m):
    return (x + m - 1) // m * m


def _pick_tile_n(coutp):
    """Largest multiple-of-128 divisor of coutp, capped at 512 (MXU-width friendly)."""
    for tn in (512, 384, 256, 128):
        if tn <= coutp and coutp % tn == 0:
            return tn
    return coutp  # coutp is always a multiple of 128 here


# ---------------------------------------------------------------------------
# Kernel A: per-image conv as shifted MXU matmuls + per-channel BN partial stats
# ---------------------------------------------------------------------------
def _conv_stats_kernel(xw_ref, w_ref, y_ref, psum_ref, psq_ref, *, taps, m):
    """xw_ref : (1, G, R*Wo, C3) bf16  row-patch activations, resident per image
       w_ref  : (T, C3, TN)      bf16  per-tap weight matrices
       y_ref  : (1, m, TN)       bf16  pre-BN conv output
       psum/psq_ref : (1, 1, TN) f32   per-image partial sum / sum-of-squares
    """
    acc = None
    for t, (g, off) in enumerate(taps):
        lhs = xw_ref[0, g, off:off + m, :]                       # static slice view
        part = jnp.dot(lhs, w_ref[t], preferred_element_type=jnp.float32)
        acc = part if acc is None else acc + part
    y_ref[0] = acc.astype(y_ref.dtype)
    # One-pass partial statistics from the f32 accumulator.
    psum_ref[0] = jnp.sum(acc, axis=0, keepdims=True)
    psq_ref[0] = jnp.sum(acc * acc, axis=0, keepdims=True)


def _conv_stats_call(xw, w_taps, *, m, taps):
    n, g, rwo, c3 = xw.shape
    t, _, coutp = w_taps.shape
    tn = _pick_tile_n(coutp)
    nj = coutp // tn
    kern = functools.partial(_conv_stats_kernel, taps=taps, m=m)
    flops = 2 * n * m * t * c3 * coutp
    bytes_acc = (xw.size * 2 * nj + w_taps.size * 2
                 + n * m * coutp * 2 + 2 * n * coutp * 4)
    return pl.pallas_call(
        kern,
        out_shape=(
            jax.ShapeDtypeStruct((n, m, coutp), jnp.bfloat16),   # pre-BN conv out
            jax.ShapeDtypeStruct((n, 1, coutp), jnp.float32),    # partial sums
            jax.ShapeDtypeStruct((n, 1, coutp), jnp.float32),    # partial sum-sq
        ),
        grid=(n, nj),
        in_specs=[
            pl.BlockSpec((1, g, rwo, c3), lambda i, j: (i, 0, 0, 0)),
            pl.BlockSpec((t, c3, tn), lambda i, j: (0, 0, j)),
        ],
        out_specs=(
            pl.BlockSpec((1, m, tn), lambda i, j: (i, 0, j)),
            pl.BlockSpec((1, 1, tn), lambda i, j: (i, 0, j)),
            pl.BlockSpec((1, 1, tn), lambda i, j: (i, 0, j)),
        ),
        compiler_params=pltpu.CompilerParams(
            dimension_semantics=("parallel", "parallel"),
            vmem_limit_bytes=VMEM_LIMIT,
        ),
        cost_estimate=pl.CostEstimate(
            flops=flops, transcendentals=0, bytes_accessed=bytes_acc),
    )(xw, w_taps)


# ---------------------------------------------------------------------------
# Kernel B: folded BN affine [+ folded-BN residual] + ReLU (lane-dense epilogue)
# ---------------------------------------------------------------------------
def _bn_relu_kernel(y_ref, scale_ref, shift_ref, o_ref):
    v = y_ref[0].astype(jnp.float32) * scale_ref[...] + shift_ref[...]
    o_ref[0] = jnp.maximum(v, 0.0).astype(o_ref.dtype)


def _bn_residual_relu_kernel(y_ref, scale_ref, shift_ref,
                             r_ref, rscale_ref, rshift_ref, o_ref):
    v = y_ref[0].astype(jnp.float32) * scale_ref[...] + shift_ref[...]
    v = v + r_ref[0].astype(jnp.float32) * rscale_ref[...] + rshift_ref[...]
    o_ref[0] = jnp.maximum(v, 0.0).astype(o_ref.dtype)


def _bn_relu_call(y, scale, shift, out_dtype=jnp.bfloat16):
    n, m, coutp = y.shape
    tn = _pick_tile_n(coutp)
    nj = coutp // tn
    bytes_acc = y.size * 2 + n * m * coutp * 2 + 2 * coutp * 4
    return pl.pallas_call(
        _bn_relu_kernel,
        out_shape=jax.ShapeDtypeStruct((n, m, coutp), out_dtype),
        grid=(n, nj),
        in_specs=[
            pl.BlockSpec((1, m, tn), lambda i, j: (i, 0, j)),
            pl.BlockSpec((1, tn), lambda i, j: (0, j)),   # fetched once (nj==1 typical)
            pl.BlockSpec((1, tn), lambda i, j: (0, j)),
        ],
        out_specs=pl.BlockSpec((1, m, tn), lambda i, j: (i, 0, j)),
        compiler_params=pltpu.CompilerParams(
            dimension_semantics=("parallel", "parallel"),
            vmem_limit_bytes=VMEM_LIMIT,
        ),
        cost_estimate=pl.CostEstimate(
            flops=3 * n * m * coutp, transcendentals=0, bytes_accessed=bytes_acc),
    )(y, scale, shift)


def _bn_residual_relu_call(y, scale, shift, res, r_scale, r_shift,
                           out_dtype=jnp.float32):
    n, m, coutp = y.shape
    tn = _pick_tile_n(coutp)
    nj = coutp // tn
    bytes_acc = y.size * 2 + res.size * 2 + n * m * coutp * 4 + 4 * coutp * 4
    return pl.pallas_call(
        _bn_residual_relu_kernel,
        out_shape=jax.ShapeDtypeStruct((n, m, coutp), out_dtype),
        grid=(n, nj),
        in_specs=[
            pl.BlockSpec((1, m, tn), lambda i, j: (i, 0, j)),
            pl.BlockSpec((1, tn), lambda i, j: (0, j)),
            pl.BlockSpec((1, tn), lambda i, j: (0, j)),
            pl.BlockSpec((1, m, tn), lambda i, j: (i, 0, j)),
            pl.BlockSpec((1, tn), lambda i, j: (0, j)),
            pl.BlockSpec((1, tn), lambda i, j: (0, j)),
        ],
        out_specs=pl.BlockSpec((1, m, tn), lambda i, j: (i, 0, j)),
        compiler_params=pltpu.CompilerParams(
            dimension_semantics=("parallel", "parallel"),
            vmem_limit_bytes=VMEM_LIMIT,
        ),
        cost_estimate=pl.CostEstimate(
            flops=6 * n * m * coutp, transcendentals=0, bytes_accessed=bytes_acc),
    )(y, scale, shift, res, r_scale, r_shift)


# ---------------------------------------------------------------------------
# Wrapper glue: W-unfolded row patches, weight reshaping, BN fold (tiny JAX)
# ---------------------------------------------------------------------------
def _row_patches_3x3(x_nhwc, stride):
    """W-unfolded, H-parity-grouped row patches for a 3x3 / padding=1 conv.

    Returns xw (N, G, R*Wo, 3*C) bf16, per-tap (group, row-offset) pairs and
    (Ho, Wo).  Activation expansion is only 3x (W taps); the 3 H taps are
    realized inside the conv kernel as shifted matmuls on the resident block.
    """
    # TODO(synk): replace with a fully in-kernel halo'd 3x3 (manual DMA of halo
    # row slabs) to remove the remaining 3x W-unfold materialization.
    n, h, w, c = x_nhwc.shape
    ho = (h + 2 - 3) // stride + 1
    wo = (w + 2 - 3) // stride + 1
    g = stride                      # parity groups of padded rows
    r = ho + (2 // g)               # rows needed per group
    rows = g * r
    x = x_nhwc.astype(jnp.bfloat16)
    xp = jnp.pad(x, ((0, 0), (1, 1 + max(0, rows - (h + 2))), (1, 1), (0, 0)))
    cols = [xp[:, :rows, dw:dw + stride * (wo - 1) + 1:stride, :] for dw in range(3)]
    xw = jnp.stack(cols, axis=3)                      # (n, rows, wo, 3, c)
    xw = xw.reshape(n, r, g, wo, 3 * c)               # padded row = k*G + parity
    xw = jnp.transpose(xw, (0, 2, 1, 3, 4))           # (n, G, R, wo, 3c)
    xw = xw.reshape(n, g, r * wo, 3 * c)
    taps = tuple((dh % g, (dh // g) * wo) for dh in range(3))
    return xw, taps, (ho, wo)


def _prep_w3x3(w_oihw, coutp):
    """(Cout, Cin, 3, 3) -> (3, 3*Cin, Coutp) bf16, dw-major / c-minor K ordering."""
    cout, cin, kh, kw = w_oihw.shape
    wt = jnp.transpose(w_oihw, (2, 3, 1, 0)).reshape(kh, kw * cin, cout)
    return jnp.pad(wt, ((0, 0), (0, 0), (0, coutp - cout))).astype(jnp.bfloat16)


def _prep_w1x1(w_oihw, coutp):
    cout, cin, _, _ = w_oihw.shape
    wt = jnp.transpose(w_oihw, (2, 3, 1, 0)).reshape(1, cin, cout)
    return jnp.pad(wt, ((0, 0), (0, 0), (0, coutp - cout))).astype(jnp.bfloat16)


def _fold_bn(psum, psq, count, gamma, beta, coutp):
    """Reduce per-image partial stats and fold batch-stats BN into scale/shift."""
    s = jnp.sum(psum[:, 0, :], axis=0)
    sq = jnp.sum(psq[:, 0, :], axis=0)
    mean = s / count
    # One-pass variance in f32, clamped at 0.  TODO(synk): shifted/two-pass form
    # if tighter accuracy is ever needed for strongly mean-shifted inputs.
    var = jnp.maximum(sq / count - mean * mean, 0.0)
    g = jnp.pad(gamma.astype(jnp.float32), (0, coutp - gamma.shape[0]))
    b = jnp.pad(beta.astype(jnp.float32), (0, coutp - beta.shape[0]))
    scale = g * jax.lax.rsqrt(var + EPS)
    shift = b - mean * scale
    return scale.reshape(1, coutp), shift.reshape(1, coutp)


# ---------------------------------------------------------------------------
# BasicBlock forward
# ---------------------------------------------------------------------------
def basic_block_forward(x_nchw, params, stride):
    """Pallas implementation of BasicBlock.forward (training-mode batch-stats BN)."""
    assert stride in (1, 2)
    x = jnp.transpose(x_nchw, (0, 2, 3, 1)).astype(jnp.float32)   # NHWC
    n, h, w, cin = x.shape
    cout = params["w1"].shape[0]
    coutp = _round_up(cout, LANE)

    # residual branch: conv1 (3x3/stride) + batch-stats BN + ReLU  (bf16)
    xw1, taps1, (ho, wo) = _row_patches_3x3(x, stride)
    m = ho * wo
    y1, ps1, pq1 = _conv_stats_call(xw1, _prep_w3x3(params["w1"], coutp),
                                    m=m, taps=taps1)
    sc1, sh1 = _fold_bn(ps1, pq1, n * m, params["g1"], params["b1"], coutp)
    a1 = _bn_relu_call(y1, sc1, sh1)                               # (n, m, coutp) bf16
    # TODO(synk): fuse this BN+ReLU into conv2's LHS load path once the fully
    # in-kernel halo'd conv lands (needs per-channel pad values to stay zero).

    # residual branch: conv2 (3x3/1); its BN affine is folded into the final kernel
    a1_nhwc = a1.reshape(n, ho, wo, coutp)[..., :cout]
    xw2, taps2, _ = _row_patches_3x3(a1_nhwc, 1)
    y2, ps2, pq2 = _conv_stats_call(xw2, _prep_w3x3(params["w2"], coutp),
                                    m=m, taps=taps2)
    sc2, sh2 = _fold_bn(ps2, pq2, n * m, params["g2"], params["b2"], coutp)

    # shortcut branch (kept bf16; its BN affine is also folded into the final kernel)
    if "ws" in params:
        xs = x[:, ::stride, ::stride, :].astype(jnp.bfloat16).reshape(n, 1, m, cin)
        ys, pss, pqs = _conv_stats_call(xs, _prep_w1x1(params["ws"], coutp),
                                        m=m, taps=((0, 0),))
        scs, shs = _fold_bn(pss, pqs, n * m, params["gs"], params["bs"], coutp)
    else:
        ys = x.reshape(n, m, cin).astype(jnp.bfloat16)
        if coutp != cin:
            ys = jnp.pad(ys, ((0, 0), (0, 0), (0, coutp - cin)))
        scs = jnp.ones((1, coutp), jnp.float32)
        shs = jnp.zeros((1, coutp), jnp.float32)

    # fused epilogue: BN2(y2) + BN_s(shortcut) -> residual add -> ReLU (single pass)
    out = _bn_residual_relu_call(y2, sc2, sh2, ys, scs, shs, out_dtype=jnp.float32)
    out = out[..., :cout].reshape(n, ho, wo, cout)
    return jnp.transpose(out, (0, 3, 1, 2))                        # -> NCHW


def init_basic_block_params(key, in_channels, out_channels, stride):
    """Deterministic synthetic parameters (BN gammas/betas at PyTorch defaults)."""
    k1, k2, k3 = jax.random.split(key, 3)
    params = {
        "w1": 0.1 * jax.random.normal(k1, (out_channels, in_channels, 3, 3), jnp.float32),
        "g1": jnp.ones((out_channels,), jnp.float32),
        "b1": jnp.zeros((out_channels,), jnp.float32),
        "w2": 0.1 * jax.random.normal(k2, (out_channels, out_channels, 3, 3), jnp.float32),
        "g2": jnp.ones((out_channels,), jnp.float32),
        "b2": jnp.zeros((out_channels,), jnp.float32),
    }
    if stride != 1 or in_channels != out_channels:
        params["ws"] = 0.1 * jax.random.normal(
            k3, (out_channels, in_channels, 1, 1), jnp.float32)
        params["gs"] = jnp.ones((out_channels,), jnp.float32)
        params["bs"] = jnp.zeros((out_channels,), jnp.float32)
    return params


# ---------------------------------------------------------------------------
# Pure-JAX reference (lax conv + batch-stats BN) for a correctness touchstone
# ---------------------------------------------------------------------------
def _ref_conv(x_nchw, w, stride, pad):
    return jax.lax.conv_general_dilated(
        x_nchw, w, window_strides=(stride, stride),
        padding=[(pad, pad), (pad, pad)],
        dimension_numbers=("NCHW", "OIHW", "NCHW"))


def _ref_bn(y_nchw, gamma, beta):
    mean = jnp.mean(y_nchw, axis=(0, 2, 3), keepdims=True)
    var = jnp.mean(jnp.square(y_nchw - mean), axis=(0, 2, 3), keepdims=True)
    return (y_nchw - mean) * jax.lax.rsqrt(var + EPS) * gamma[None, :, None, None] \
        + beta[None, :, None, None]


def basic_block_reference(x_nchw, params, stride):
    y = _ref_conv(x_nchw, params["w1"], stride, 1)
    y = jnp.maximum(_ref_bn(y, params["g1"], params["b1"]), 0.0)
    y = _ref_conv(y, params["w2"], 1, 1)
    y = _ref_bn(y, params["g2"], params["b2"])
    if "ws" in params:
        s = _ref_conv(x_nchw, params["ws"], stride, 0)
        s = _ref_bn(s, params["gs"], params["bs"])
    else:
        s = x_nchw
    return jnp.maximum(y + s, 0.0)


if __name__ == "__main__":
    key = jax.random.PRNGKey(0)
    kx, kp, kx2, kp2 = jax.random.split(key, 4)
    fwd = jax.jit(basic_block_forward, static_argnums=2)

    # Test 1: projection shortcut  (BasicBlock(4, 8, stride=2))
    N, Cin, H, W = 2, 4, 16, 16
    Cout, stride = 8, 2
    x = jax.random.normal(kx, (N, Cin, H, W), jnp.float32)   # NCHW, like PyTorch
    params = init_basic_block_params(kp, Cin, Cout, stride)
    out = jax.block_until_ready(fwd(x, params, stride))
    ref = jax.block_until_ready(basic_block_reference(x, params, stride))
    assert out.shape == (N, Cout, H // stride, W // stride), out.shape
    # bf16 MXU operands / bf16 intermediates -> loosened tolerance vs f32 reference
    assert jnp.allclose(out, ref, atol=5e-2, rtol=5e-2), \
        float(jnp.max(jnp.abs(out - ref)))

    # Test 2: identity shortcut (BasicBlock(8, 8, stride=1)); exercises the
    # cross-image BN partial-stat reduction and the bf16 identity residual.
    x2 = jax.random.normal(kx2, (2, 8, 16, 16), jnp.float32)
    params2 = init_basic_block_params(kp2, 8, 8, 1)
    out2 = jax.block_until_ready(fwd(x2, params2, 1))
    ref2 = jax.block_until_ready(basic_block_reference(x2, params2, 1))
    assert jnp.allclose(out2, ref2, atol=5e-2, rtol=5e-2), \
        float(jnp.max(jnp.abs(out2 - ref2)))

    print("KERNEL_OK")
</pallas_src>

<mosaic_0001>
module attributes {stable_mosaic.version = 11 : i64} {
  func.func @_bn_relu_kernel(%arg0: i32, %arg1: i32, %arg2: memref<1x64x128xbf16, #tpu.memory_space<vmem>>, %arg3: memref<1x128xf32, #tpu.memory_space<vmem>>, %arg4: memref<1x128xf32, #tpu.memory_space<vmem>>, %arg5: memref<1x64x128xbf16, #tpu.memory_space<vmem>>) attributes {dimension_semantics = [#tpu.dimension_semantics<parallel>, #tpu.dimension_semantics<parallel>], iteration_bounds = array<i64: 2, 1>, scalar_prefetch = 0 : i64, scratch_operands = 0 : i64, tpu.core_type = #tpu.core_type<tc>, window_params = [{transform_indices = @transform_0, window_bounds = array<i64: 1, 64, 128>}, {transform_indices = @transform_1, window_bounds = array<i64: 1, 128>}, {transform_indices = @transform_2, window_bounds = array<i64: 1, 128>}, {transform_indices = @transform_3, window_bounds = array<i64: 1, 64, 128>}]} {
    %c0 = arith.constant 0 : index
    %c0_0 = arith.constant 0 : index
    %c0_1 = arith.constant 0 : index
    %0 = vector.load %arg2[%c0, %c0_0, %c0_1] : memref<1x64x128xbf16, #tpu.memory_space<vmem>>, vector<1x64x128xbf16>
    %1 = vector.shape_cast %0 : vector<1x64x128xbf16> to vector<64x128xbf16>
    %2 = arith.extf %1 : vector<64x128xbf16> to vector<64x128xf32>
    %c0_2 = arith.constant 0 : index
    %c0_3 = arith.constant 0 : index
    %3 = vector.load %arg3[%c0_2, %c0_3] : memref<1x128xf32, #tpu.memory_space<vmem>>, vector<1x128xf32>
    %4 = vector.broadcast %3 : vector<1x128xf32> to vector<64x128xf32>
    %5 = arith.mulf %2, %4 : vector<64x128xf32>
    %c0_4 = arith.constant 0 : index
    %c0_5 = arith.constant 0 : index
    %6 = vector.load %arg4[%c0_4, %c0_5] : memref<1x128xf32, #tpu.memory_space<vmem>>, vector<1x128xf32>
    %7 = vector.broadcast %6 : vector<1x128xf32> to vector<64x128xf32>
    %8 = arith.addf %5, %7 : vector<64x128xf32>
    %cst = arith.constant 0.000000e+00 : f32
    %9 = vector.broadcast %cst : f32 to vector<64x128xf32>
    %10 = arith.maximumf %8, %9 : vector<64x128xf32>
    %11 = arith.truncf %10 : vector<64x128xf32> to vector<64x128xbf16>
    %c0_6 = arith.constant 0 : index
    %c0_7 = arith.constant 0 : index
    %c0_8 = arith.constant 0 : index
    %12 = vector.load %arg5[%c0_6, %c0_7, %c0_8] : memref<1x64x128xbf16, #tpu.memory_space<vmem>>, vector<1x64x128xbf16>
    %13 = vector.shape_cast %12 : vector<1x64x128xbf16> to vector<64x128xbf16>
    %14 = vector.shape_cast %11 : vector<64x128xbf16> to vector<1x64x128xbf16>
    tpu.vector_store %arg5[%c0_6, %c0_7, %c0_8], %14 {strides = array<i32>} : memref<1x64x128xbf16, #tpu.memory_space<vmem>>, vector<1x64x128xbf16>,
    return
  }
  func.func @transform_0(%arg0: i32, %arg1: i32) -> (i32, i32, i32) {
    %c0_i32 = arith.constant 0 : i32
    %c0_i32_0 = arith.constant 0 : i32
    return %arg0, %c0_i32, %arg1 : i32, i32, i32
  }
  func.func @transform_1(%arg0: i32, %arg1: i32) -> (i32, i32) {
    %c0_i32 = arith.constant 0 : i32
    %c0_i32_0 = arith.constant 0 : i32
    return %c0_i32, %arg1 : i32, i32
  }
  func.func @transform_2(%arg0: i32, %arg1: i32) -> (i32, i32) {
    %c0_i32 = arith.constant 0 : i32
    %c0_i32_0 = arith.constant 0 : i32
    return %c0_i32, %arg1 : i32, i32
  }
  func.func @transform_3(%arg0: i32, %arg1: i32) -> (i32, i32, i32) {
    %c0_i32 = arith.constant 0 : i32
    %c0_i32_0 = arith.constant 0 : i32
    return %arg0, %c0_i32, %arg1 : i32, i32, i32
  }
}

module attributes {stable_mosaic.version = 11 : i64} {
  func.func @_conv_stats_kernel(%arg0: i32, %arg1: i32, %arg2: memref<1x2x72x12xbf16, #tpu.memory_space<vmem>>, %arg3: memref<3x12x128xbf16, #tpu.memory_space<vmem>>, %arg4: memref<1x64x128xbf16, #tpu.memory_space<vmem>>, %arg5: memref<1x1x128xf32, #tpu.memory_space<vmem>>, %arg6: memref<1x1x128xf32, #tpu.memory_space<vmem>>) attributes {dimension_semantics = [#tpu.dimension_semantics<parallel>, #tpu.dimension_semantics<parallel>], iteration_bounds = array<i64: 2, 1>, scalar_prefetch = 0 : i64, scratch_operands = 0 : i64, tpu.core_type = #tpu.core_type<tc>, window_params = [{transform_indices = @transform_0, window_bounds = array<i64: 1, 2, 72, 12>}, {transform_indices = @transform_1, window_bounds = array<i64: 3, 12, 128>}, {transform_indices = @transform_2, window_bounds = array<i64: 1, 64, 128>}, {transform_indices = @transform_3, window_bounds = array<i64: 1, 1, 128>}, {transform_indices = @transform_4, window_bounds = array<i64: 1, 1, 128>}]} {
    %c0 = arith.constant 0 : index
    %c0_0 = arith.constant 0 : index
    %c0_1 = arith.constant 0 : index
    %c0_2 = arith.constant 0 : index
    %0 = vector.load %arg2[%c0, %c0_0, %c0_1, %c0_2] : memref<1x2x72x12xbf16, #tpu.memory_space<vmem>>, vector<1x1x64x12xbf16>
    %1 = vector.shape_cast %0 : vector<1x1x64x12xbf16> to vector<64x12xbf16>
    %c0_3 = arith.constant 0 : index
    %c0_4 = arith.constant 0 : index
    %c0_5 = arith.constant 0 : index
    %2 = vector.load %arg3[%c0_3, %c0_4, %c0_5] : memref<3x12x128xbf16, #tpu.memory_space<vmem>>, vector<1x12x128xbf16>
    %3 = vector.shape_cast %2 : vector<1x12x128xbf16> to vector<12x128xbf16>
    %cst = arith.constant dense<0.000000e+00> : vector<64x128xf32>
    %4 = tpu.matmul %1, %3, %cst {dimension_numbers = #tpu.dot_dimension_numbers<[1], [0], [0], [1], [0, 0, 1, 1], [], []>} : vector<64x12xbf16>, vector<12x128xbf16>, vector<64x128xf32> -> vector<64x128xf32>
    %c0_6 = arith.constant 0 : index
    %c1 = arith.constant 1 : index
    %c0_7 = arith.constant 0 : index
    %c0_8 = arith.constant 0 : index
    %5 = vector.load %arg2[%c0_6, %c1, %c0_7, %c0_8] : memref<1x2x72x12xbf16, #tpu.memory_space<vmem>>, vector<1x1x64x12xbf16>
    %6 = vector.shape_cast %5 : vector<1x1x64x12xbf16> to vector<64x12xbf16>
    %c1_9 = arith.constant 1 : index
    %c0_10 = arith.constant 0 : index
    %c0_11 = arith.constant 0 : index
    %7 = vector.load %arg3[%c1_9, %c0_10, %c0_11] : memref<3x12x128xbf16, #tpu.memory_space<vmem>>, vector<1x12x128xbf16>
    %8 = vector.shape_cast %7 : vector<1x12x128xbf16> to vector<12x128xbf16>
    %cst_12 = arith.constant dense<0.000000e+00> : vector<64x128xf32>
    %9 = tpu.matmul %6, %8, %cst_12 {dimension_numbers = #tpu.dot_dimension_numbers<[1], [0], [0], [1], [0, 0, 1, 1], [], []>} : vector<64x12xbf16>, vector<12x128xbf16>, vector<64x128xf32> -> vector<64x128xf32>
    %10 = arith.addf %4, %9 : vector<64x128xf32>
    %c0_13 = arith.constant 0 : index
    %c0_14 = arith.constant 0 : index
    %c8 = arith.constant 8 : index
    %c0_15 = arith.constant 0 : index
    %11 = vector.load %arg2[%c0_13, %c0_14, %c8, %c0_15] : memref<1x2x72x12xbf16, #tpu.memory_space<vmem>>, vector<1x1x64x12xbf16>
    %12 = vector.shape_cast %11 : vector<1x1x64x12xbf16> to vector<64x12xbf16>
    %c2 = arith.constant 2 : index
    %c0_16 = arith.constant 0 : index
    %c0_17 = arith.constant 0 : index
    %13 = vector.load %arg3[%c2, %c0_16, %c0_17] : memref<3x12x128xbf16, #tpu.memory_space<vmem>>, vector<1x12x128xbf16>
    %14 = vector.shape_cast %13 : vector<1x12x128xbf16> to vector<12x128xbf16>
    %cst_18 = arith.constant dense<0.000000e+00> : vector<64x128xf32>
    %15 = tpu.matmul %12, %14, %cst_18 {dimension_numbers = #tpu.dot_dimension_numbers<[1], [0], [0], [1], [0, 0, 1, 1], [], []>} : vector<64x12xbf16>, vector<12x128xbf16>, vector<64x128xf32> -> vector<64x128xf32>
    %16 = arith.addf %10, %15 : vector<64x128xf32>
    %17 = arith.truncf %16 : vector<64x128xf32> to vector<64x128xbf16>
    %c0_19 = arith.constant 0 : index
    %c0_20 = arith.constant 0 : index
    %c0_21 = arith.constant 0 : index
    %18 = vector.load %arg4[%c0_19, %c0_20, %c0_21] : memref<1x64x128xbf16, #tpu.memory_space<vmem>>, vector<1x64x128xbf16>
    %19 = vector.shape_cast %18 : vector<1x64x128xbf16> to vector<64x128xbf16>
    %20 = vector.shape_cast %17 : vector<64x128xbf16> to vector<1x64x128xbf16>
    tpu.vector_store %arg4[%c0_19, %c0_20, %c0_21], %20 {strides = array<i32>} : memref<1x64x128xbf16, #tpu.memory_space<vmem>>, vector<1x64x128xbf16>,
    %cst_22 = arith.constant dense<0.000000e+00> : vector<128xf32>
    %21 = vector.multi_reduction <add>, %16, %cst_22 [0] : vector<64x128xf32> to vector<128xf32>
    %22 = vector.shape_cast %21 : vector<128xf32> to vector<1x128xf32>
    %c0_23 = arith.constant 0 : index
    %c0_24 = arith.constant 0 : index
    %c0_25 = arith.constant 0 : index
    %23 = vector.load %arg5[%c0_23, %c0_24, %c0_25] : memref<1x1x128xf32, #tpu.memory_space<vmem>>, vector<1x1x128xf32>
    %24 = vector.shape_cast %23 : vector<1x1x128xf32> to vector<1x128xf32>
    %25 = vector.shape_cast %22 : vector<1x128xf32> to vector<1x1x128xf32>
    tpu.vector_store %arg5[%c0_23, %c0_24, %c0_25], %25 {strides = array<i32>} : memref<1x1x128xf32, #tpu.memory_space<vmem>>, vector<1x1x128xf32>,
    %26 = arith.mulf %16, %16 : vector<64x128xf32>
    %cst_26 = arith.constant dense<0.000000e+00> : vector<128xf32>
    %27 = vector.multi_reduction <add>, %26, %cst_26 [0] : vector<64x128xf32> to vector<128xf32>
    %28 = vector.shape_cast %27 : vector<128xf32> to vector<1x128xf32>
    %c0_27 = arith.constant 0 : index
    %c0_28 = arith.constant 0 : index
    %c0_29 = arith.constant 0 : index
    %29 = vector.load %arg6[%c0_27, %c0_28, %c0_29] : memref<1x1x128xf32, #tpu.memory_space<vmem>>, vector<1x1x128xf32>
    %30 = vector.shape_cast %29 : vector<1x1x128xf32> to vector<1x128xf32>
    %31 = vector.shape_cast %28 : vector<1x128xf32> to vector<1x1x128xf32>
    tpu.vector_store %arg6[%c0_27, %c0_28, %c0_29], %31 {strides = array<i32>} : memref<1x1x128xf32, #tpu.memory_space<vmem>>, vector<1x1x128xf32>,
    return
  }
  func.func @transform_0(%arg0: i32, %arg1: i32) -> (i32, i32, i32, i32) {
    %c0_i32 = arith.constant 0 : i32
    %c0_i32_0 = arith.constant 0 : i32
    %c0_i32_1 = arith.constant 0 : i32
    %c0_i32_2 = arith.constant 0 : i32
    return %arg0, %c0_i32, %c0_i32_0, %c0_i32_1 : i32, i32, i32, i32
  }
  func.func @transform_1(%arg0: i32, %arg1: i32) -> (i32, i32, i32) {
    %c0_i32 = arith.constant 0 : i32
    %c0_i32_0 = arith.constant 0 : i32
    %c0_i32_1 = arith.constant 0 : i32
    return %c0_i32, %c0_i32_0, %arg1 : i32, i32, i32
  }
  func.func @transform_2(%arg0: i32, %arg1: i32) -> (i32, i32, i32) {
    %c0_i32 = arith.constant 0 : i32
    %c0_i32_0 = arith.constant 0 : i32
    return %arg0, %c0_i32, %arg1 : i32, i32, i32
  }
  func.func @transform_3(%arg0: i32, %arg1: i32) -> (i32, i32, i32) {
    %c0_i32 = arith.constant 0 : i32
    %c0_i32_0 = arith.constant 0 : i32
    return %arg0, %c0_i32, %arg1 : i32, i32, i32
  }
  func.func @transform_4(%arg0: i32, %arg1: i32) -> (i32, i32, i32) {
    %c0_i32 = arith.constant 0 : i32
    %c0_i32_0 = arith.constant 0 : i32
    return %arg0, %c0_i32, %arg1 : i32, i32, i32
  }
}

module attributes {stable_mosaic.version = 11 : i64} {
  func.func @_conv_stats_kernel(%arg0: i32, %arg1: i32, %arg2: memref<1x1x80x24xbf16, #tpu.memory_space<vmem>>, %arg3: memref<3x24x128xbf16, #tpu.memory_space<vmem>>, %arg4: memref<1x64x128xbf16, #tpu.memory_space<vmem>>, %arg5: memref<1x1x128xf32, #tpu.memory_space<vmem>>, %arg6: memref<1x1x128xf32, #tpu.memory_space<vmem>>) attributes {dimension_semantics = [#tpu.dimension_semantics<parallel>, #tpu.dimension_semantics<parallel>], iteration_bounds = array<i64: 2, 1>, scalar_prefetch = 0 : i64, scratch_operands = 0 : i64, tpu.core_type = #tpu.core_type<tc>, window_params = [{transform_indices = @transform_0, window_bounds = array<i64: 1, 1, 80, 24>}, {transform_indices = @transform_1, window_bounds = array<i64: 3, 24, 128>}, {transform_indices = @transform_2, window_bounds = array<i64: 1, 64, 128>}, {transform_indices = @transform_3, window_bounds = array<i64: 1, 1, 128>}, {transform_indices = @transform_4, window_bounds = array<i64: 1, 1, 128>}]} {
    %c0 = arith.constant 0 : index
    %c0_0 = arith.constant 0 : index
    %c0_1 = arith.constant 0 : index
    %c0_2 = arith.constant 0 : index
    %0 = vector.load %arg2[%c0, %c0_0, %c0_1, %c0_2] : memref<1x1x80x24xbf16, #tpu.memory_space<vmem>>, vector<1x1x64x24xbf16>
    %1 = vector.shape_cast %0 : vector<1x1x64x24xbf16> to vector<64x24xbf16>
    %c0_3 = arith.constant 0 : index
    %c0_4 = arith.constant 0 : index
    %c0_5 = arith.constant 0 : index
    %2 = vector.load %arg3[%c0_3, %c0_4, %c0_5] : memref<3x24x128xbf16, #tpu.memory_space<vmem>>, vector<1x24x128xbf16>
    %3 = vector.shape_cast %2 : vector<1x24x128xbf16> to vector<24x128xbf16>
    %cst = arith.constant dense<0.000000e+00> : vector<64x128xf32>
    %4 = tpu.matmul %1, %3, %cst {dimension_numbers = #tpu.dot_dimension_numbers<[1], [0], [0], [1], [0, 0, 1, 1], [], []>} : vector<64x24xbf16>, vector<24x128xbf16>, vector<64x128xf32> -> vector<64x128xf32>
    %c0_6 = arith.constant 0 : index
    %c0_7 = arith.constant 0 : index
    %c8 = arith.constant 8 : index
    %c0_8 = arith.constant 0 : index
    %5 = vector.load %arg2[%c0_6, %c0_7, %c8, %c0_8] : memref<1x1x80x24xbf16, #tpu.memory_space<vmem>>, vector<1x1x64x24xbf16>
    %6 = vector.shape_cast %5 : vector<1x1x64x24xbf16> to vector<64x24xbf16>
    %c1 = arith.constant 1 : index
    %c0_9 = arith.constant 0 : index
    %c0_10 = arith.constant 0 : index
    %7 = vector.load %arg3[%c1, %c0_9, %c0_10] : memref<3x24x128xbf16, #tpu.memory_space<vmem>>, vector<1x24x128xbf16>
    %8 = vector.shape_cast %7 : vector<1x24x128xbf16> to vector<24x128xbf16>
    %cst_11 = arith.constant dense<0.000000e+00> : vector<64x128xf32>
    %9 = tpu.matmul %6, %8, %cst_11 {dimension_numbers = #tpu.dot_dimension_numbers<[1], [0], [0], [1], [0, 0, 1, 1], [], []>} : vector<64x24xbf16>, vector<24x128xbf16>, vector<64x128xf32> -> vector<64x128xf32>
    %10 = arith.addf %4, %9 : vector<64x128xf32>
    %c0_12 = arith.constant 0 : index
    %c0_13 = arith.constant 0 : index
    %c16 = arith.constant 16 : index
    %c0_14 = arith.constant 0 : index
    %11 = vector.load %arg2[%c0_12, %c0_13, %c16, %c0_14] : memref<1x1x80x24xbf16, #tpu.memory_space<vmem>>, vector<1x1x64x24xbf16>
    %12 = vector.shape_cast %11 : vector<1x1x64x24xbf16> to vector<64x24xbf16>
    %c2 = arith.constant 2 : index
    %c0_15 = arith.constant 0 : index
    %c0_16 = arith.constant 0 : index
    %13 = vector.load %arg3[%c2, %c0_15, %c0_16] : memref<3x24x128xbf16, #tpu.memory_space<vmem>>, vector<1x24x128xbf16>
    %14 = vector.shape_cast %13 : vector<1x24x128xbf16> to vector<24x128xbf16>
    %cst_17 = arith.constant dense<0.000000e+00> : vector<64x128xf32>
    %15 = tpu.matmul %12, %14, %cst_17 {dimension_numbers = #tpu.dot_dimension_numbers<[1], [0], [0], [1], [0, 0, 1, 1], [], []>} : vector<64x24xbf16>, vector<24x128xbf16>, vector<64x128xf32> -> vector<64x128xf32>
    %16 = arith.addf %10, %15 : vector<64x128xf32>
    %17 = arith.truncf %16 : vector<64x128xf32> to vector<64x128xbf16>
    %c0_18 = arith.constant 0 : index
    %c0_19 = arith.constant 0 : index
    %c0_20 = arith.constant 0 : index
    %18 = vector.load %arg4[%c0_18, %c0_19, %c0_20] : memref<1x64x128xbf16, #tpu.memory_space<vmem>>, vector<1x64x128xbf16>
    %19 = vector.shape_cast %18 : vector<1x64x128xbf16> to vector<64x128xbf16>
    %20 = vector.shape_cast %17 : vector<64x128xbf16> to vector<1x64x128xbf16>
    tpu.vector_store %arg4[%c0_18, %c0_19, %c0_20], %20 {strides = array<i32>} : memref<1x64x128xbf16, #tpu.memory_space<vmem>>, vector<1x64x128xbf16>,
    %cst_21 = arith.constant dense<0.000000e+00> : vector<128xf32>
    %21 = vector.multi_reduction <add>, %16, %cst_21 [0] : vector<64x128xf32> to vector<128xf32>
    %22 = vector.shape_cast %21 : vector<128xf32> to vector<1x128xf32>
    %c0_22 = arith.constant 0 : index
    %c0_23 = arith.constant 0 : index
    %c0_24 = arith.constant 0 : index
    %23 = vector.load %arg5[%c0_22, %c0_23, %c0_24] : memref<1x1x128xf32, #tpu.memory_space<vmem>>, vector<1x1x128xf32>
    %24 = vector.shape_cast %23 : vector<1x1x128xf32> to vector<1x128xf32>
    %25 = vector.shape_cast %22 : vector<1x128xf32> to vector<1x1x128xf32>
    tpu.vector_store %arg5[%c0_22, %c0_23, %c0_24], %25 {strides = array<i32>} : memref<1x1x128xf32, #tpu.memory_space<vmem>>, vector<1x1x128xf32>,
    %26 = arith.mulf %16, %16 : vector<64x128xf32>
    %cst_25 = arith.constant dense<0.000000e+00> : vector<128xf32>
    %27 = vector.multi_reduction <add>, %26, %cst_25 [0] : vector<64x128xf32> to vector<128xf32>
    %28 = vector.shape_cast %27 : vector<128xf32> to vector<1x128xf32>
    %c0_26 = arith.constant 0 : index
    %c0_27 = arith.constant 0 : index
    %c0_28 = arith.constant 0 : index
    %29 = vector.load %arg6[%c0_26, %c0_27, %c0_28] : memref<1x1x128xf32, #tpu.memory_space<vmem>>, vector<1x1x128xf32>
    %30 = vector.shape_cast %29 : vector<1x1x128xf32> to vector<1x128xf32>
    %31 = vector.shape_cast %28 : vector<1x128xf32> to vector<1x1x128xf32>
    tpu.vector_store %arg6[%c0_26, %c0_27, %c0_28], %31 {strides = array<i32>} : memref<1x1x128xf32, #tpu.memory_space<vmem>>, vector<1x1x128xf32>,
    return
  }
  func.func @transform_0(%arg0: i32, %arg1: i32) -> (i32, i32, i32, i32) {
    %c0_i32 = arith.constant 0 : i32
    %c0_i32_0 = arith.constant 0 : i32
    %c0_i32_1 = arith.constant 0 : i32
    %c0_i32_2 = arith.constant 0 : i32
    return %arg0, %c0_i32, %c0_i32_0, %c0_i32_1 : i32, i32, i32, i32
  }
  func.func @transform_1(%arg0: i32, %arg1: i32) -> (i32, i32, i32) {
    %c0_i32 = arith.constant 0 : i32
    %c0_i32_0 = arith.constant 0 : i32
    %c0_i32_1 = arith.constant 0 : i32
    return %c0_i32, %c0_i32_0, %arg1 : i32, i32, i32
  }
  func.func @transform_2(%arg0: i32, %arg1: i32) -> (i32, i32, i32) {
    %c0_i32 = arith.constant 0 : i32
    %c0_i32_0 = arith.constant 0 : i32
    return %arg0, %c0_i32, %arg1 : i32, i32, i32
  }
  func.func @transform_3(%arg0: i32, %arg1: i32) -> (i32, i32, i32) {
    %c0_i32 = arith.constant 0 : i32
    %c0_i32_0 = arith.constant 0 : i32
    return %arg0, %c0_i32, %arg1 : i32, i32, i32
  }
  func.func @transform_4(%arg0: i32, %arg1: i32) -> (i32, i32, i32) {
    %c0_i32 = arith.constant 0 : i32
    %c0_i32_0 = arith.constant 0 : i32
    return %arg0, %c0_i32, %arg1 : i32, i32, i32
  }
}

module attributes {stable_mosaic.version = 11 : i64} {
  func.func @_bn_residual_relu_kernel(%arg0: i32, %arg1: i32, %arg2: memref<1x64x128xbf16, #tpu.memory_space<vmem>>, %arg3: memref<1x128xf32, #tpu.memory_space<vmem>>, %arg4: memref<1x128xf32, #tpu.memory_space<vmem>>, %arg5: memref<1x64x128xbf16, #tpu.memory_space<vmem>>, %arg6: memref<1x128xf32, #tpu.memory_space<vmem>>, %arg7: memref<1x128xf32, #tpu.memory_space<vmem>>, %arg8: memref<1x64x128xf32, #tpu.memory_space<vmem>>) attributes {dimension_semantics = [#tpu.dimension_semantics<parallel>, #tpu.dimension_semantics<parallel>], iteration_bounds = array<i64: 2, 1>, scalar_prefetch = 0 : i64, scratch_operands = 0 : i64, tpu.core_type = #tpu.core_type<tc>, window_params = [{transform_indices = @transform_0, window_bounds = array<i64: 1, 64, 128>}, {transform_indices = @transform_1, window_bounds = array<i64: 1, 128>}, {transform_indices = @transform_2, window_bounds = array<i64: 1, 128>}, {transform_indices = @transform_3, window_bounds = array<i64: 1, 64, 128>}, {transform_indices = @transform_4, window_bounds = array<i64: 1, 128>}, {transform_indices = @transform_5, window_bounds = array<i64: 1, 128>}, {transform_indices = @transform_6, window_bounds = array<i64: 1, 64, 128>}]} {
    %c0 = arith.constant 0 : index
    %c0_0 = arith.constant 0 : index
    %c0_1 = arith.constant 0 : index
    %0 = vector.load %arg2[%c0, %c0_0, %c0_1] : memref<1x64x128xbf16, #tpu.memory_space<vmem>>, vector<1x64x128xbf16>
    %1 = vector.shape_cast %0 : vector<1x64x128xbf16> to vector<64x128xbf16>
    %2 = arith.extf %1 : vector<64x128xbf16> to vector<64x128xf32>
    %c0_2 = arith.constant 0 : index
    %c0_3 = arith.constant 0 : index
    %3 = vector.load %arg3[%c0_2, %c0_3] : memref<1x128xf32, #tpu.memory_space<vmem>>, vector<1x128xf32>
    %4 = vector.broadcast %3 : vector<1x128xf32> to vector<64x128xf32>
    %5 = arith.mulf %2, %4 : vector<64x128xf32>
    %c0_4 = arith.constant 0 : index
    %c0_5 = arith.constant 0 : index
    %6 = vector.load %arg4[%c0_4, %c0_5] : memref<1x128xf32, #tpu.memory_space<vmem>>, vector<1x128xf32>
    %7 = vector.broadcast %6 : vector<1x128xf32> to vector<64x128xf32>
    %8 = arith.addf %5, %7 : vector<64x128xf32>
    %c0_6 = arith.constant 0 : index
    %c0_7 = arith.constant 0 : index
    %c0_8 = arith.constant 0 : index
    %9 = vector.load %arg5[%c0_6, %c0_7, %c0_8] : memref<1x64x128xbf16, #tpu.memory_space<vmem>>, vector<1x64x128xbf16>
    %10 = vector.shape_cast %9 : vector<1x64x128xbf16> to vector<64x128xbf16>
    %11 = arith.extf %10 : vector<64x128xbf16> to vector<64x128xf32>
    %c0_9 = arith.constant 0 : index
    %c0_10 = arith.constant 0 : index
    %12 = vector.load %arg6[%c0_9, %c0_10] : memref<1x128xf32, #tpu.memory_space<vmem>>, vector<1x128xf32>
    %13 = vector.broadcast %12 : vector<1x128xf32> to vector<64x128xf32>
    %14 = arith.mulf %11, %13 : vector<64x128xf32>
    %15 = arith.addf %8, %14 : vector<64x128xf32>
    %c0_11 = arith.constant 0 : index
    %c0_12 = arith.constant 0 : index
    %16 = vector.load %arg7[%c0_11, %c0_12] : memref<1x128xf32, #tpu.memory_space<vmem>>, vector<1x128xf32>
    %17 = vector.broadcast %16 : vector<1x128xf32> to vector<64x128xf32>
    %18 = arith.addf %15, %17 : vector<64x128xf32>
    %cst = arith.constant 0.000000e+00 : f32
    %19 = vector.broadcast %cst : f32 to vector<64x128xf32>
    %20 = arith.maximumf %18, %19 : vector<64x128xf32>
    %c0_13 = arith.constant 0 : index
    %c0_14 = arith.constant 0 : index
    %c0_15 = arith.constant 0 : index
    %21 = vector.load %arg8[%c0_13, %c0_14, %c0_15] : memref<1x64x128xf32, #tpu.memory_space<vmem>>, vector<1x64x128xf32>
    %22 = vector.shape_cast %21 : vector<1x64x128xf32> to vector<64x128xf32>
    %23 = vector.shape_cast %20 : vector<64x128xf32> to vector<1x64x128xf32>
    tpu.vector_store %arg8[%c0_13, %c0_14, %c0_15], %23 {strides = array<i32>} : memref<1x64x128xf32, #tpu.memory_space<vmem>>, vector<1x64x128xf32>,
    return
  }
  func.func @transform_0(%arg0: i32, %arg1: i32) -> (i32, i32, i32) {
    %c0_i32 = arith.constant 0 : i32
    %c0_i32_0 = arith.constant 0 : i32
    return %arg0, %c0_i32, %arg1 : i32, i32, i32
  }
  func.func @transform_1(%arg0: i32, %arg1: i32) -> (i32, i32) {
    %c0_i32 = arith.constant 0 : i32
    %c0_i32_0 = arith.constant 0 : i32
    return %c0_i32, %arg1 : i32, i32
  }
  func.func @transform_2(%arg0: i32, %arg1: i32) -> (i32, i32) {
    %c0_i32 = arith.constant 0 : i32
    %c0_i32_0 = arith.constant 0 : i32
    return %c0_i32, %arg1 : i32, i32
  }
  func.func @transform_3(%arg0: i32, %arg1: i32) -> (i32, i32, i32) {
    %c0_i32 = arith.constant 0 : i32
    %c0_i32_0 = arith.constant 0 : i32
    return %arg0, %c0_i32, %arg1 : i32, i32, i32
  }
  func.func @transform_4(%arg0: i32, %arg1: i32) -> (i32, i32) {
    %c0_i32 = arith.constant 0 : i32
    %c0_i32_0 = arith.constant 0 : i32
    return %c0_i32, %arg1 : i32, i32
  }
  func.func @transform_5(%arg0: i32, %arg1: i32) -> (i32, i32) {
    %c0_i32 = arith.constant 0 : i32
    %c0_i32_0 = arith.constant 0 : i32
    return %c0_i32, %arg1 : i32, i32
  }
  func.func @transform_6(%arg0: i32, %arg1: i32) -> (i32, i32, i32) {
    %c0_i32 = arith.constant 0 : i32
    %c0_i32_0 = arith.constant 0 : i32
    return %arg0, %c0_i32, %arg1 : i32, i32, i32
  }
}

module attributes {stable_mosaic.version = 11 : i64} {
  func.func @_conv_stats_kernel(%arg0: i32, %arg1: i32, %arg2: memref<1x1x64x4xbf16, #tpu.memory_space<vmem>>, %arg3: memref<1x4x128xbf16, #tpu.memory_space<vmem>>, %arg4: memref<1x64x128xbf16, #tpu.memory_space<vmem>>, %arg5: memref<1x1x128xf32, #tpu.memory_space<vmem>>, %arg6: memref<1x1x128xf32, #tpu.memory_space<vmem>>) attributes {dimension_semantics = [#tpu.dimension_semantics<parallel>, #tpu.dimension_semantics<parallel>], iteration_bounds = array<i64: 2, 1>, scalar_prefetch = 0 : i64, scratch_operands = 0 : i64, tpu.core_type = #tpu.core_type<tc>, window_params = [{transform_indices = @transform_0, window_bounds = array<i64: 1, 1, 64, 4>}, {transform_indices = @transform_1, window_bounds = array<i64: 1, 4, 128>}, {transform_indices = @transform_2, window_bounds = array<i64: 1, 64, 128>}, {transform_indices = @transform_3, window_bounds = array<i64: 1, 1, 128>}, {transform_indices = @transform_4, window_bounds = array<i64: 1, 1, 128>}]} {
    %c0 = arith.constant 0 : index
    %c0_0 = arith.constant 0 : index
    %c0_1 = arith.constant 0 : index
    %c0_2 = arith.constant 0 : index
    %0 = vector.load %arg2[%c0, %c0_0, %c0_1, %c0_2] : memref<1x1x64x4xbf16, #tpu.memory_space<vmem>>, vector<1x1x64x4xbf16>
    %1 = vector.shape_cast %0 : vector<1x1x64x4xbf16> to vector<64x4xbf16>
    %c0_3 = arith.constant 0 : index
    %c0_4 = arith.constant 0 : index
    %c0_5 = arith.constant 0 : index
    %2 = vector.load %arg3[%c0_3, %c0_4, %c0_5] : memref<1x4x128xbf16, #tpu.memory_space<vmem>>, vector<1x4x128xbf16>
    %3 = vector.shape_cast %2 : vector<1x4x128xbf16> to vector<4x128xbf16>
    %cst = arith.constant dense<0.000000e+00> : vector<64x128xf32>
    %4 = tpu.matmul %1, %3, %cst {dimension_numbers = #tpu.dot_dimension_numbers<[1], [0], [0], [1], [0, 0, 1, 1], [], []>} : vector<64x4xbf16>, vector<4x128xbf16>, vector<64x128xf32> -> vector<64x128xf32>
    %5 = arith.truncf %4 : vector<64x128xf32> to vector<64x128xbf16>
    %c0_6 = arith.constant 0 : index
    %c0_7 = arith.constant 0 : index
    %c0_8 = arith.constant 0 : index
    %6 = vector.load %arg4[%c0_6, %c0_7, %c0_8] : memref<1x64x128xbf16, #tpu.memory_space<vmem>>, vector<1x64x128xbf16>
    %7 = vector.shape_cast %6 : vector<1x64x128xbf16> to vector<64x128xbf16>
    %8 = vector.shape_cast %5 : vector<64x128xbf16> to vector<1x64x128xbf16>
    tpu.vector_store %arg4[%c0_6, %c0_7, %c0_8], %8 {strides = array<i32>} : memref<1x64x128xbf16, #tpu.memory_space<vmem>>, vector<1x64x128xbf16>,
    %cst_9 = arith.constant dense<0.000000e+00> : vector<128xf32>
    %9 = vector.multi_reduction <add>, %4, %cst_9 [0] : vector<64x128xf32> to vector<128xf32>
    %10 = vector.shape_cast %9 : vector<128xf32> to vector<1x128xf32>
    %c0_10 = arith.constant 0 : index
    %c0_11 = arith.constant 0 : index
    %c0_12 = arith.constant 0 : index
    %11 = vector.load %arg5[%c0_10, %c0_11, %c0_12] : memref<1x1x128xf32, #tpu.memory_space<vmem>>, vector<1x1x128xf32>
    %12 = vector.shape_cast %11 : vector<1x1x128xf32> to vector<1x128xf32>
    %13 = vector.shape_cast %10 : vector<1x128xf32> to vector<1x1x128xf32>
    tpu.vector_store %arg5[%c0_10, %c0_11, %c0_12], %13 {strides = array<i32>} : memref<1x1x128xf32, #tpu.memory_space<vmem>>, vector<1x1x128xf32>,
    %14 = arith.mulf %4, %4 : vector<64x128xf32>
    %cst_13 = arith.constant dense<0.000000e+00> : vector<128xf32>
    %15 = vector.multi_reduction <add>, %14, %cst_13 [0] : vector<64x128xf32> to vector<128xf32>
    %16 = vector.shape_cast %15 : vector<128xf32> to vector<1x128xf32>
    %c0_14 = arith.constant 0 : index
    %c0_15 = arith.constant 0 : index
    %c0_16 = arith.constant 0 : index
    %17 = vector.load %arg6[%c0_14, %c0_15, %c0_16] : memref<1x1x128xf32, #tpu.memory_space<vmem>>, vector<1x1x128xf32>
    %18 = vector.shape_cast %17 : vector<1x1x128xf32> to vector<1x128xf32>
    %19 = vector.shape_cast %16 : vector<1x128xf32> to vector<1x1x128xf32>
    tpu.vector_store %arg6[%c0_14, %c0_15, %c0_16], %19 {strides = array<i32>} : memref<1x1x128xf32, #tpu.memory_space<vmem>>, vector<1x1x128xf32>,
    return
  }
  func.func @transform_0(%arg0: i32, %arg1: i32) -> (i32, i32, i32, i32) {
    %c0_i32 = arith.constant 0 : i32
    %c0_i32_0 = arith.constant 0 : i32
    %c0_i32_1 = arith.constant 0 : i32
    %c0_i32_2 = arith.constant 0 : i32
    return %arg0, %c0_i32, %c0_i32_0, %c0_i32_1 : i32, i32, i32, i32
  }
  func.func @transform_1(%arg0: i32, %arg1: i32) -> (i32, i32, i32) {
    %c0_i32 = arith.constant 0 : i32
    %c0_i32_0 = arith.constant 0 : i32
    %c0_i32_1 = arith.constant 0 : i32
    return %c0_i32, %c0_i32_0, %arg1 : i32, i32, i32
  }
  func.func @transform_2(%arg0: i32, %arg1: i32) -> (i32, i32, i32) {
    %c0_i32 = arith.constant 0 : i32
    %c0_i32_0 = arith.constant 0 : i32
    return %arg0, %c0_i32, %arg1 : i32, i32, i32
  }
  func.func @transform_3(%arg0: i32, %arg1: i32) -> (i32, i32, i32) {
    %c0_i32 = arith.constant 0 : i32
    %c0_i32_0 = arith.constant 0 : i32
    return %arg0, %c0_i32, %arg1 : i32, i32, i32
  }
  func.func @transform_4(%arg0: i32, %arg1: i32) -> (i32, i32, i32) {
    %c0_i32 = arith.constant 0 : i32
    %c0_i32_0 = arith.constant 0 : i32
    return %arg0, %c0_i32, %arg1 : i32, i32, i32
  }
}

</mosaic_0001>

<bundles_post_ra>
// kernel: basic_block_forward.6
= control target key start
LH: loop header
LB: loop body
LE: loop exit
PB: predicated region body
PF: predicated region fallthrough
CT: control target
= control target key end

     0   :  { %s575_s12 = smov 0   ;;  %s577_s13 = smov 0   ;;  %s621_s0 = inlined_call_operand.vmem [shape: bf16[2,64,128], index: 0, kind: input, shape index: {}]   ;;  %s622_s1 = inlined_call_operand.vmem [shape: f32[1,128], index: 1, kind: input, shape index: {}]   ;;  %s623_s2 = inlined_call_operand.vmem [shape: f32[1,128], index: 2, kind: input, shape index: {}]   ;;  %s624_s3 = inlined_call_operand.vmem [shape: bf16[2,64,128], index: 3, kind: output, shape index: {}]  }
   0x1   :  { %s579_s14 = smov 0  }
   0x2 LB: > { %s25_s15 = sadd.s32 1, %s549_s13  ;;  %p438_p0 = scmp.ge.s32.totalorder %s553_s14, 1  ;;  %s553_s14 = sphi %s579_s14, %s13_s14   ;;  %s549_s13 = sphi %s577_s13, %s626_s13   ;;  %s545_s12 = sphi %s575_s12, %s625_s12  }
   0x3   : > { %p27_p1 = scmp.ge.s32.totalorder %s25_s15, 2  ;;  %p172_p2 = scmp.lt.s32.totalorder %s553_s14, 3 }
   0x5   : > { %s628_s15 = smov (%p27_p1, %s25_s15), 0  ;;  %p173_p3 = pnand %p438_p0, %p172_p2 }
   0x6   : > { %p208_p4 = scmp.lt.s32.totalorder (!%p173_p3), %s545_s12, 1 }
   0x7   : > { %176 = sbr.rel (%p173_p3) target bundleno = 28 (0x1c), region = 32 }
   0xc   : > { %s630_s12 = smov (!%p208_p4, %s545_s12), 1  ;;  %v443_v0 = vld [vmem:[%s622_s1] ss:$0 sm:$0xff] }
   0xd   : > { %s455_s16 = sshll.u32 %s630_s12, 5  ;;  %v444_v9 = vld [vmem:[%s623_s2] ss:$0 sm:$0xff] }
   0xe   : > { %s215_s19 = scalar_lea.vmem %s621_s0, %s455_s16  ;;  %s229_s26 = scalar_lea.vmem %s624_s3, %s455_s16 }
   0xf   : > { %v466_v1 = vld [vmem:[%s215_s19] sm:$0xff]   ;;  %v501_v2 = vld [vmem:[%s215_s19 + $0x8] sm:$0xff]   ;;  %v502_v3 = vld [vmem:[%s215_s19 + $0x10] sm:$0xff]  }
  0x10   : > { %v467_v4 = vunpack.c.l.bf16 %v466_v1  ;;  %v468_v5 = vunpack.c.h.bf16 %v466_v1  ;;  %v471_v6 = vunpack.c.l.bf16 %v501_v2  ;;  %v472_v7 = vunpack.c.h.bf16 %v501_v2  ;;  %v503_v8 = vld [vmem:[%s215_s19 + $0x18] sm:$0xff]  }
  0x11   : > { %v475_v10 = vunpack.c.l.bf16 %v502_v3  ;;  %v476_v11 = vunpack.c.h.bf16 %v502_v3  ;;  %v479_v12 = vunpack.c.l.bf16 %v503_v8  ;;  %v480_v13 = vunpack.c.h.bf16 %v503_v8 }
  0x12   : > { %v253_v14 = vmul.f32 %v467_v4, %v443_v0  ;;  %v254_v15 = vmul.f32 %v468_v5, %v443_v0  ;;  %v255_v16 = vmul.f32 %v471_v6, %v443_v0  ;;  %v256_v17 = vmul.f32 %v472_v7, %v443_v0 }
  0x13   : > { %v257_v18 = vmul.f32 %v475_v10, %v443_v0  ;;  %v258_v19 = vmul.f32 %v476_v11, %v443_v0  ;;  %v259_v20 = vmul.f32 %v479_v12, %v443_v0  ;;  %v260_v21 = vmul.f32 %v480_v13, %v443_v0 }
  0x14   : > { %v268_v22 = vadd.f32 %v444_v9, %v253_v14  ;;  %v269_v23 = vadd.f32 %v444_v9, %v254_v15  ;;  %v270_v24 = vadd.f32 %v444_v9, %v255_v16  ;;  %v271_v25 = vadd.f32 %v444_v9, %v256_v17 }
  0x15   : > { %v272_v26 = vadd.f32 %v444_v9, %v257_v18  ;;  %v273_v27 = vadd.f32 %v444_v9, %v258_v19  ;;  %v274_v28 = vadd.f32 %v444_v9, %v259_v20  ;;  %v275_v29 = vadd.f32 %v444_v9, %v260_v21 }
  0x16   : > { %v276_v30 = vmax.f32 %v268_v22, 0.0  ;;  %v277_v31 = vmax.f32 %v269_v23, 0.0  ;;  %v278_v32 = vmax.f32 %v270_v24, 0.0  ;;  %v279_v33 = vmax.f32 %v271_v25, 0.0 }
  0x17   : > { %v280_v34 = vmax.f32 %v272_v26, 0.0  ;;  %v281_v35 = vmax.f32 %v273_v27, 0.0  ;;  %v282_v36 = vmax.f32 %v274_v28, 0.0  ;;  %v283_v37 = vmax.f32 %v275_v29, 0.0 }
  0x18   : > { %v484_v38 = vpack.c.bf16 %v277_v31, %v276_v30  ;;  %v489_v39 = vpack.c.bf16 %v279_v33, %v278_v32 }
  0x19   : > { %v494_v40 = vpack.c.bf16 %v281_v35, %v280_v34  ;;  %v499_v41 = vpack.c.bf16 %v283_v37, %v282_v36 }
  0x1a   : > { %485 = vst [vmem:[%s229_s26] sm:$0xff] %v484_v38   ;;  %504 = vst [vmem:[%s229_s26 + $0x8] sm:$0xff] %v489_v39  }
  0x1b   : > { %505 = vst [vmem:[%s229_s26 + $0x10] sm:$0xff] %v494_v40   ;;  %506 = vst [vmem:[%s229_s26 + $0x18] sm:$0xff] %v499_v41  }
  0x1c PF: > { %s13_s14 = sadd.s32 1, %s553_s14   ;;  %s625_s12 = smov %s549_s13 }
  0x1d   : > { %p10_p5 = scmp.ge.s32.totalorder %s13_s14, 4   ;;  %s626_s13 = smov %s628_s15 }
  0x1f   :  { %12 = sbr.rel (!%p10_p5) target bundleno = 2 (0x2), region = 68 }

// kernel: basic_block_forward.5
= control target key start
LH: loop header
LB: loop body
LE: loop exit
PB: predicated region body
PF: predicated region fallthrough
CT: control target
= control target key end

     0   :  { %s1096_s15 = smov 0   ;;  %s1098_s16 = smov 0   ;;  %s1175_s0 = inlined_call_operand.vmem [shape: bf16[2,2,72,12], index: 0, kind: input, shape index: {}]   ;;  %s1176_s1 = inlined_call_operand.vmem [shape: bf16[3,12,128], index: 1, kind: input, shape index: {}]   ;;  %s1177_s2 = inlined_call_operand.vmem [shape: bf16[2,64,128], index: 2, kind: output, shape index: {0}]   ;;  %s1178_s3 = inlined_call_operand.vmem [shape: f32[2,1,128], index: 3, kind: output, shape index: {1}]   ;;  %s1179_s4 = inlined_call_operand.vmem [shape: f32[2,1,128], index: 4, kind: output, shape index: {2}]  }
   0x1   :  { %s1100_s17 = smov 0  }
   0x2 LB: > { %s27_s18 = sadd.s32 1, %s1065_s16  ;;  %p871_p0 = scmp.ge.s32.totalorder %s1069_s17, 1  ;;  %s1069_s17 = sphi %s1100_s17, %s15_s17   ;;  %s1065_s16 = sphi %s1098_s16, %s1181_s16   ;;  %s1061_s15 = sphi %s1096_s15, %s1180_s15  }
   0x3   : > { %p29_p1 = scmp.ge.s32.totalorder %s27_s18, 2  ;;  %p194_p2 = scmp.lt.s32.totalorder %s1069_s17, 3 }
   0x5   : > { %s1183_s18 = smov (%p29_p1, %s27_s18), 0  ;;  %p195_p3 = pnand %p871_p0, %p194_p2 }
   0x6   : > { %p239_p4 = scmp.lt.s32.totalorder (!%p195_p3), %s1061_s15, 1 }
   0x7   : > { %198 = sbr.rel (%p195_p3) target bundleno = 258 (0x102), region = 28 }
   0xc   : > { %v1032_v0 = vld [vmem:[%s1176_s1 + $0x8] sm:$0x3f]   ;;  %vm329_vm0 = vcmask 1045504   ;;  %v1035_v2 = vld [vmem:[%s1176_s1] sm:$0x3f]   ;;  %s1185_s15 = smov (!%p239_p4, %s1061_s15), 1 }
   0xd   : > { %1004 = vmatprep.subr.msk.bf16.mxu1 %vm329_vm0, %v1032_v0  ;;  %1003 = vmatprep.subr.msk.bf16.mxu0 %vm329_vm0, %v1032_v0  ;;  %v331_v1 = vsel %vm329_vm0, %v1032_v0, 0  ;;  %v1038_v3 = vld [vmem:[%s1176_s1 + $0x10] sm:$0x3f]   ;;  %s1007_s25 = smul.u32 72, %s1185_s15  ;;  %vm316_vm1 = vcmask 97280   ;;  %v436_v9 = vsel %vm329_vm0, %v1035_v2, 0  ;;  %s261_s9 = scalar_lea.vmem %s1178_s3, %s1185_s15 }
   0xe   : > { %1002 = vmatpush3.bf16.msra.mxu1 %v331_v1  ;;  %972 = vmatpush3.bf16.msra.mxu0 %v331_v1  ;;  %v552_v7 = vsel %vm329_vm0, %v1038_v3, 0  ;;  %s924_s29 = sshll.u32 %s1185_s15, 5  ;;  %s267_s12 = scalar_lea.vmem %s1179_s4, %s1185_s15 }
   0xf   : > { %1005 = vmatprep.subr.msk.bf16.mxu1 %vm329_vm0, %v1035_v2  ;;  %1006 = vmatprep.subr.msk.bf16.mxu0 %vm329_vm0, %v1038_v3  ;;  %s243_s28 = scalar_lea.vmem %s1175_s0, %s1007_s25  ;;  %s1152_s6 = scalar_lea.vmem %s1177_s2, %s924_s29 }
  0x10   : > { %v1033_v4 = vld [vmem:[%s243_s28 + $0x24] sm:$0xff]   ;;  %v1034_v5 = vld [vmem:[%s243_s28 + $0x34] sm:$0xff]   ;;  %v1036_v6 = vld [vmem:[%s243_s28 + $0x2c] sm:$0xff]  }
  0x11   : > { %973 = vmatprep.mubr.msk.bf16.mxu0 %vm316_vm1, %v1033_v4  ;;  %977 = vmatprep.mubr.msk.bf16.mxu1 %vm316_vm1, %v1034_v5  ;;  %v1037_v8 = vld [vmem:[%s243_s28 + $0x3c] sm:$0xff]   ;;  %v1040_v11 = vld [vmem:[%s243_s28 + $0x4] sm:$0xff]   ;;  %v1042_v13 = vld [vmem:[%s243_s28 + $0xc] sm:$0xff]  }
  0x12   : > { %974 = vmatmul.mubr.msk.bf16.vlgmr.msra.gmra.mxu0 %vm316_vm1, %v1036_v6  ;;  %v1039_v10 = vld [vmem:[%s243_s28] sm:$0xff]   ;;  %978 = vmatmul.mubr.msk.bf16.vlgmr.msra.gmra.mxu1 %vm316_vm1, %v1037_v8  ;;  %v1041_v12 = vld [vmem:[%s243_s28 + $0x8] sm:$0xff]   ;;  %v1044_v14 = vld [vmem:[%s243_s28 + $0x14] sm:$0xff]  }
  0x13   : > { %992 = vmatpush3.bf16.msra.mxu0 %v552_v7  ;;  %982 = vmatpush3.bf16.msra.mxu1 %v436_v9  ;;  %v1043_v15 = vld [vmem:[%s243_s28 + $0x10] sm:$0xff]   ;;  %v1046_v16 = vld [vmem:[%s243_s28 + $0x1c] sm:$0xff]  }
  0x14   : > { %983 = vmatprep.mubr.msk.bf16.mxu1 %vm316_vm1, %v1039_v10  ;;  %993 = vmatprep.mubr.msk.bf16.mxu0 %vm316_vm1, %v1040_v11  ;;  %v1045_v17 = vld [vmem:[%s243_s28 + $0x18] sm:$0xff]  }
  0x1a   : > { %994 = vmatmul.mubr.msk.bf16.vlgmr.msra.gmra.mxu0 %vm316_vm1, %v1042_v13  ;;  %984 = vmatmul.mubr.msk.bf16.vlgmr.msra.gmra.mxu1 %vm316_vm1, %v1041_v12 }
  0x1b   : > { %997 = vmatprep.mubr.msk.bf16.mxu0 %vm316_vm1, %v1044_v14  ;;  %987 = vmatprep.mubr.msk.bf16.mxu1 %vm316_vm1, %v1043_v15 }
  0x22   : > { %998 = vmatmul.mubr.msk.bf16.gmra.mxu0 %vm316_vm1, %v1046_v16  ;;  %988 = vmatmul.mubr.msk.bf16.gmra.mxu1 %vm316_vm1, %v1045_v17 }
  0xd2   : > { %v975_v18 = vpop.f32.mrf.mxu0  ;;  %v979_v19 = vpop.f32.mrf.mxu1 }
  0xd4   : > { %v367_v20 = vpop.f32.mrf.mxu0  ;;  %v383_v21 = vpop.f32.mrf.mxu1 }
  0xd6   : > { %v976_v22 = vpop.f32.mrf.mxu0  ;;  %v980_v23 = vpop.f32.mrf.mxu1 }
  0xd8   : > { %v370_v24 = vpop.f32.mrf.mxu0  ;;  %v386_v25 = vpop.f32.mrf.mxu1 }
  0xda   : > { %v995_v26 = vpop.f32.mrf.mxu0  ;;  %v985_v27 = vpop.f32.mrf.mxu1 }
  0xdb   : > { %v481_v30 = vadd.f32 %v985_v27, %v975_v18 }
  0xdc   : > { %v588_v28 = vpop.f32.mrf.mxu0  ;;  %v472_v29 = vpop.f32.mrf.mxu1 }
  0xdd   : > { %v473_v31 = vadd.f32 %v472_v29, %v367_v20  ;;  %v621_v37 = vadd.f32 %v995_v26, %v481_v30 }
  0xde   : > { %v996_v32 = vpop.f32.mrf.mxu0  ;;  %v986_v33 = vpop.f32.mrf.mxu1 }
  0xdf   : > { %v484_v34 = vadd.f32 %v986_v33, %v976_v22  ;;  %v619_v38 = vadd.f32 %v588_v28, %v473_v31  ;;  %v683_v54 = vmul.f32 %v621_v37, %v621_v37 }
  0xe0   : > { %v591_v35 = vpop.f32.mrf.mxu0  ;;  %v475_v36 = vpop.f32.mrf.mxu1 }
  0xe1   : > { %v622_v39 = vadd.f32 %v996_v32, %v484_v34  ;;  %v476_v40 = vadd.f32 %v475_v36, %v370_v24  ;;  %v681_v48 = vmul.f32 %v619_v38, %v619_v38 }
  0xe2   : > { %v999_v41 = vpop.f32.mrf.mxu0  ;;  %v989_v42 = vpop.f32.mrf.mxu1 }
  0xe3   : > { %v941_v43 = vpack.c.bf16 %v622_v39, %v621_v37  ;;  %v620_v44 = vadd.f32 %v591_v35, %v476_v40  ;;  %v497_v46 = vadd.f32 %v989_v42, %v979_v19  ;;  %v684_v59 = vmul.f32 %v622_v39, %v622_v39 }
  0xe4   : > { %v604_v45 = vpop.f32.mrf.mxu0  ;;  %v488_v47 = vpop.f32.mrf.mxu1 }
  0xe5   : > { %953 = vst [vmem:[%s1152_s6 + $0x8] sm:$0xff] %v941_v43   ;;  %v936_v49 = vpack.c.bf16 %v620_v44, %v619_v38  ;;  %v667_v50 = vadd.f32 %v620_v44, %v619_v38  ;;  %v682_v51 = vmul.f32 %v620_v44, %v620_v44  ;;  %v489_v52 = vadd.f32 %v488_v47, %v383_v21 }
  0xe6   : > { %v990_v53 = vpop.f32.mrf.mxu1  ;;  %v1000_v58 = vpop.f32.mrf.mxu0  ;;  %v625_v60 = vadd.f32 %v999_v41, %v497_v46 }
  0xe7   : > { %937 = vst [vmem:[%s1152_s6] sm:$0xff] %v936_v49   ;;  %v668_v55 = vadd.f32 %v667_v50, %v621_v37  ;;  %v689_v56 = vadd.f32 %v682_v51, %v681_v48  ;;  %v500_v57 = vadd.f32 %v990_v53, %v980_v23  ;;  %v623_v61 = vadd.f32 %v604_v45, %v489_v52 }
  0xe8   : > { %v491_v62 = vpop.f32.mrf.mxu1  ;;  %v607_v7 = vpop.f32.mrf.mxu0  ;;  %v687_v13 = vmul.f32 %v625_v60, %v625_v60 }
  0xe9   : > { %v690_v63 = vadd.f32 %v689_v56, %v683_v54  ;;  %v669_v0 = vadd.f32 %v668_v55, %v622_v39  ;;  %v626_v1 = vadd.f32 %v1000_v58, %v500_v57  ;;  %v492_v2 = vadd.f32 %v491_v62, %v386_v25 }
  0xea   : > { %v685_v4 = vmul.f32 %v623_v61, %v623_v61 }
  0xeb   : > { %v670_v3 = vadd.f32 %v669_v0, %v623_v61  ;;  %v691_v5 = vadd.f32 %v690_v63, %v684_v59  ;;  %v951_v6 = vpack.c.bf16 %v626_v1, %v625_v60  ;;  %v624_v8 = vadd.f32 %v607_v7, %v492_v2 }
  0xec   : > { %v688_v16 = vmul.f32 %v626_v1, %v626_v1 }
  0xed   : > { %v692_v9 = vadd.f32 %v691_v5, %v685_v4  ;;  %955 = vst [vmem:[%s1152_s6 + $0x18] sm:$0xff] %v951_v6   ;;  %v946_v10 = vpack.c.bf16 %v624_v8, %v623_v61  ;;  %v671_v11 = vadd.f32 %v670_v3, %v624_v8  ;;  %v686_v12 = vmul.f32 %v624_v8, %v624_v8 }
  0xef   : > { %954 = vst [vmem:[%s1152_s6 + $0x10] sm:$0xff] %v946_v10   ;;  %v672_v14 = vadd.f32 %v671_v11, %v625_v60  ;;  %v693_v15 = vadd.f32 %v692_v9, %v686_v12 }
  0xf1   : > { %v673_v17 = vadd.f32 %v672_v14, %v626_v1  ;;  %v694_v18 = vadd.f32 %v693_v15, %v687_v13 }
  0xf3   : > { %v674_v19 = vrot.slane %v673_v17, 4  ;;  %v695_v20 = vadd.f32 %v694_v18, %v688_v16 }
  0xf5   : > { %v675_v21 = vadd.f32 %v674_v19, %v673_v17  ;;  %v696_v22 = vrot.slane %v695_v20, 4 }
  0xf7   : > { %v676_v23 = vrot.slane %v675_v21, 2  ;;  %v697_v24 = vadd.f32 %v696_v22, %v695_v20 }
  0xf9   : > { %v677_v25 = vadd.f32 %v676_v23, %v675_v21  ;;  %v698_v26 = vrot.slane %v697_v24, 2 }
  0xfb   : > { %v678_v27 = vrot.slane %v677_v25, 1  ;;  %v699_v28 = vadd.f32 %v698_v26, %v697_v24 }
  0xfd   : > { %v679_v29 = vadd.f32 %v678_v27, %v677_v25  ;;  %v700_v30 = vrot.slane %v699_v28, 1 }
  0xff   : > { %680 = vst [vmem:[%s261_s9] sm:$0x1] %v679_v29  ;;  %v701_v31 = vadd.f32 %v700_v30, %v699_v28 }
 0x101   : > { %702 = vst [vmem:[%s267_s12] sm:$0x1] %v701_v31 }
 0x102 PF: > { %s15_s17 = sadd.s32 1, %s1069_s17   ;;  %s1180_s15 = smov %s1065_s16 }
 0x103   : > { %p12_p5 = scmp.ge.s32.totalorder %s15_s17, 4   ;;  %s1181_s16 = smov %s1183_s18 }
 0x105   :  { %14 = sbr.rel (!%p12_p5) target bundleno = 2 (0x2), region = 88 }

// kernel: basic_block_forward.9
= control target key start
LH: loop header
LB: loop body
LE: loop exit
PB: predicated region body
PF: predicated region fallthrough
CT: control target
= control target key end

     0   :  { %s781_s21 = smov 0   ;;  %s783_s22 = smov 0   ;;  %s885_s0 = inlined_call_operand.vmem [shape: bf16[2,64,128], index: 0, kind: input, shape index: {}]   ;;  %s886_s1 = inlined_call_operand.vmem [shape: f32[1,128], index: 1, kind: input, shape index: {}]   ;;  %s887_s2 = inlined_call_operand.vmem [shape: f32[1,128], index: 2, kind: input, shape index: {}]   ;;  %s888_s3 = inlined_call_operand.vmem [shape: bf16[2,64,128], index: 3, kind: input, shape index: {}]   ;;  %s889_s4 = inlined_call_operand.vmem [shape: f32[1,128], index: 4, kind: input, shape index: {}]   ;;  %s890_s5 = inlined_call_operand.vmem [shape: f32[1,128], index: 5, kind: input, shape index: {}]   ;;  %s891_s6 = inlined_call_operand.vmem [shape: f32[2,64,128], index: 6, kind: output, shape index: {}]  }
   0x1   :  { %s785_s23 = smov 0  }
   0x2 LB: > { %s28_s24 = sadd.s32 1, %s740_s22  ;;  %p644_p0 = scmp.ge.s32.totalorder %s744_s23, 1  ;;  %s744_s23 = sphi %s785_s23, %s16_s23   ;;  %s740_s22 = sphi %s783_s22, %s893_s22   ;;  %s736_s21 = sphi %s781_s21, %s892_s21  }
   0x3   : > { %p30_p1 = scmp.ge.s32.totalorder %s28_s24, 2  ;;  %p278_p2 = scmp.lt.s32.totalorder %s744_s23, 3 }
   0x5   : > { %s895_s24 = smov (%p30_p1, %s28_s24), 0  ;;  %p279_p3 = pnand %p644_p0, %p278_p2 }
   0x6   : > { %p334_p4 = scmp.lt.s32.totalorder (!%p279_p3), %s736_s21, 1 }
   0x7   : > { %282 = sbr.rel (%p279_p3) target bundleno = 41 (0x29), region = 44 }
   0xc   : > { %s897_s21 = smov (!%p334_p4, %s736_s21), 1  ;;  %v815_v0 = vld [vmem:[%s886_s1] ss:$0 sm:$0xff] }
   0xd   : > { %s657_s25 = sshll.u32 %s897_s21, 5  ;;  %v820_v1 = vld [vmem:[%s889_s4] ss:$0 sm:$0xff]  ;;  %s659_s16 = sshll.u32 %s897_s21, 6 }
   0xe   : > { %s805_s28 = scalar_lea.vmem %s885_s0, %s657_s25  ;;  %s810_s7 = scalar_lea.vmem %s888_s3, %s657_s25  ;;  %v829_v10 = vld [vmem:[%s887_s2] ss:$0 sm:$0xff] }
   0xf   : > { %v661_v2 = vld [vmem:[%s805_s28] sm:$0xff]   ;;  %v692_v4 = vld [vmem:[%s805_s28 + $0x8] sm:$0xff]   ;;  %v693_v15 = vld [vmem:[%s805_s28 + $0x10] sm:$0xff]   ;;  %s859_s19 = scalar_lea.vmem %s891_s6, %s659_s16 }
  0x10   : > { %v677_v3 = vld [vmem:[%s810_s7] sm:$0xff]   ;;  %v662_v5 = vunpack.c.l.bf16 %v661_v2  ;;  %v663_v7 = vunpack.c.h.bf16 %v661_v2  ;;  %v695_v9 = vld [vmem:[%s810_s7 + $0x8] sm:$0xff]   ;;  %v666_v11 = vunpack.c.l.bf16 %v692_v4  ;;  %v667_v13 = vunpack.c.h.bf16 %v692_v4  ;;  %v696_v16 = vld [vmem:[%s810_s7 + $0x10] sm:$0xff]  }
  0x11   : > { %v678_v6 = vunpack.c.l.bf16 %v677_v3  ;;  %v679_v8 = vunpack.c.h.bf16 %v677_v3  ;;  %v682_v12 = vunpack.c.l.bf16 %v695_v9  ;;  %v683_v14 = vunpack.c.h.bf16 %v695_v9  ;;  %v654_v29 = vld [vmem:[%s890_s5] ss:$0 sm:$0xff]  ;;  %v694_v34 = vld [vmem:[%s805_s28 + $0x18] sm:$0xff]  }
  0x12   : > { %v393_v17 = vmul.f32 %v662_v5, %v815_v0  ;;  %v394_v19 = vmul.f32 %v663_v7, %v815_v0  ;;  %v395_v21 = vmul.f32 %v666_v11, %v815_v0  ;;  %v396_v23 = vmul.f32 %v667_v13, %v815_v0  ;;  %v697_v39 = vld [vmem:[%s810_s7 + $0x18] sm:$0xff]  }
  0x13   : > { %v439_v18 = vmul.f32 %v678_v6, %v820_v1  ;;  %v440_v20 = vmul.f32 %v679_v8, %v820_v1  ;;  %v441_v22 = vmul.f32 %v682_v12, %v820_v1  ;;  %v442_v24 = vmul.f32 %v683_v14, %v820_v1 }
  0x14   : > { %v408_v25 = vadd.f32 %v829_v10, %v393_v17  ;;  %v409_v26 = vadd.f32 %v829_v10, %v394_v19  ;;  %v670_v27 = vunpack.c.l.bf16 %v693_v15  ;;  %v686_v28 = vunpack.c.l.bf16 %v696_v16 }
  0x15   : > { %v410_v30 = vadd.f32 %v829_v10, %v395_v21  ;;  %v411_v31 = vadd.f32 %v829_v10, %v396_v23  ;;  %v671_v32 = vunpack.c.h.bf16 %v693_v15  ;;  %v687_v33 = vunpack.c.h.bf16 %v696_v16 }
  0x16   : > { %v447_v35 = vadd.f32 %v439_v18, %v408_v25  ;;  %v448_v36 = vadd.f32 %v440_v20, %v409_v26  ;;  %v397_v37 = vmul.f32 %v670_v27, %v815_v0  ;;  %v443_v38 = vmul.f32 %v686_v28, %v820_v1 }
  0x17   : > { %v449_v40 = vadd.f32 %v441_v22, %v410_v30  ;;  %v450_v41 = vadd.f32 %v442_v24, %v411_v31  ;;  %v398_v42 = vmul.f32 %v671_v32, %v815_v0  ;;  %v444_v43 = vmul.f32 %v687_v33, %v820_v1 }
  0x18   : > { %v462_v44 = vadd.f32 %v654_v29, %v447_v35  ;;  %v463_v45 = vadd.f32 %v654_v29, %v448_v36  ;;  %v412_v46 = vadd.f32 %v829_v10, %v397_v37  ;;  %v674_v47 = vunpack.c.l.bf16 %v694_v34 }
  0x19   : > { %v464_v48 = vadd.f32 %v654_v29, %v449_v40  ;;  %v465_v49 = vadd.f32 %v654_v29, %v450_v41  ;;  %v413_v50 = vadd.f32 %v829_v10, %v398_v42  ;;  %v690_v51 = vunpack.c.l.bf16 %v697_v39 }
  0x1a   : > { %v470_v52 = vmax.f32 %v462_v44, 0.0  ;;  %v471_v53 = vmax.f32 %v463_v45, 0.0  ;;  %v451_v54 = vadd.f32 %v443_v38, %v412_v46  ;;  %v399_v55 = vmul.f32 %v674_v47, %v815_v0 }
  0x1b   : > { %v472_v56 = vmax.f32 %v464_v48, 0.0  ;;  %v473_v57 = vmax.f32 %v465_v49, 0.0  ;;  %v452_v58 = vadd.f32 %v444_v43, %v413_v50  ;;  %v445_v59 = vmul.f32 %v690_v51, %v820_v1 }
  0x1c   : > { %478 = vst [vmem:[%s859_s19] sm:$0xff] %v470_v52  ;;  %479 = vst [vmem:[%s859_s19 + $0x8] sm:$0xff] %v471_v53  ;;  %v466_v60 = vadd.f32 %v654_v29, %v451_v54  ;;  %v414_v61 = vadd.f32 %v829_v10, %v399_v55  ;;  %v675_v62 = vunpack.c.h.bf16 %v694_v34  ;;  %v691_v63 = vunpack.c.h.bf16 %v697_v39 }
  0x1d   : > { %480 = vst [vmem:[%s859_s19 + $0x10] sm:$0xff] %v472_v56  ;;  %481 = vst [vmem:[%s859_s19 + $0x18] sm:$0xff] %v473_v57  ;;  %v467_v2 = vadd.f32 %v654_v29, %v452_v58 }
  0x1e   : > { %v474_v3 = vmax.f32 %v466_v60, 0.0  ;;  %v453_v4 = vadd.f32 %v445_v59, %v414_v61  ;;  %v400_v5 = vmul.f32 %v675_v62, %v815_v0  ;;  %v446_v6 = vmul.f32 %v691_v63, %v820_v1 }
  0x1f   : > { %v475_v7 = vmax.f32 %v467_v2, 0.0 }
  0x20   : > { %482 = vst [vmem:[%s859_s19 + $0x20] sm:$0xff] %v474_v3  ;;  %v468_v8 = vadd.f32 %v654_v29, %v453_v4  ;;  %v415_v9 = vadd.f32 %v829_v10, %v400_v5 }
  0x21   : > { %483 = vst [vmem:[%s859_s19 + $0x28] sm:$0xff] %v475_v7 }
  0x22   : > { %v476_v11 = vmax.f32 %v468_v8, 0.0  ;;  %v454_v12 = vadd.f32 %v446_v6, %v415_v9 }
  0x24   : > { %484 = vst [vmem:[%s859_s19 + $0x30] sm:$0xff] %v476_v11  ;;  %v469_v13 = vadd.f32 %v654_v29, %v454_v12 }
  0x26   : > { %v477_v14 = vmax.f32 %v469_v13, 0.0 }
  0x28   : > { %485 = vst [vmem:[%s859_s19 + $0x38] sm:$0xff] %v477_v14 }
  0x29 PF: > { %s16_s23 = sadd.s32 1, %s744_s23   ;;  %s892_s21 = smov %s740_s22 }
  0x2a   : > { %p13_p5 = scmp.ge.s32.totalorder %s16_s23, 4   ;;  %s893_s22 = smov %s895_s24 }
  0x2c   :  { %15 = sbr.rel (!%p13_p5) target bundleno = 2 (0x2), region = 89 }

// kernel: basic_block_forward.7
= control target key start
LH: loop header
LB: loop body
LE: loop exit
PB: predicated region body
PF: predicated region fallthrough
CT: control target
= control target key end

     0   :  { %s1100_s15 = smov 0   ;;  %s1102_s16 = smov 0   ;;  %s1203_s0 = inlined_call_operand.vmem [shape: bf16[2,1,80,24], index: 0, kind: input, shape index: {}]   ;;  %s1204_s1 = inlined_call_operand.vmem [shape: bf16[3,24,128], index: 1, kind: input, shape index: {}]   ;;  %s1205_s2 = inlined_call_operand.vmem [shape: bf16[2,64,128], index: 2, kind: output, shape index: {0}]   ;;  %s1206_s3 = inlined_call_operand.vmem [shape: f32[2,1,128], index: 3, kind: output, shape index: {1}]   ;;  %s1207_s4 = inlined_call_operand.vmem [shape: f32[2,1,128], index: 4, kind: output, shape index: {2}]  }
   0x1   :  { %s1104_s17 = smov 0  }
   0x2 LB: > { %s27_s18 = sadd.s32 1, %s1069_s16  ;;  %p864_p0 = scmp.ge.s32.totalorder %s1073_s17, 1  ;;  %s1073_s17 = sphi %s1104_s17, %s15_s17   ;;  %s1069_s16 = sphi %s1102_s16, %s1209_s16   ;;  %s1065_s15 = sphi %s1100_s15, %s1208_s15  }
   0x3   : > { %p29_p1 = scmp.ge.s32.totalorder %s27_s18, 2  ;;  %p194_p2 = scmp.lt.s32.totalorder %s1073_s17, 3 }
   0x5   : > { %s1211_s18 = smov (%p29_p1, %s27_s18), 0  ;;  %p195_p3 = pnand %p864_p0, %p194_p2 }
   0x6   : > { %p239_p4 = scmp.lt.s32.totalorder (!%p195_p3), %s1065_s15, 1 }
   0x7   : > { %198 = sbr.rel (%p195_p3) target bundleno = 262 (0x106), region = 28 }
   0xc   : > { %v1033_v0 = vld [vmem:[%s1204_s1 + $0x14] ss:$0 sps:$4 sm:$0xff]   ;;  %vm327_vm0 = vcmask 1043456   ;;  %v1034_v1 = vld [vmem:[%s1204_s1 + $0xc] sm:$0xff]   ;;  %s1213_s15 = smov (!%p239_p4, %s1065_s15), 1  ;;  %vm314_vm1 = vcmask 195584  }
   0xd   : > { %1004 = vmatprep.subr.msk.bf16.mxu0 %vm327_vm0, %v1033_v0  ;;  %1005 = vmatprep.subr.msk.bf16.mxu1 %vm327_vm0, %v1033_v0  ;;  %v329_v2 = vsel %vm327_vm0, %v1033_v0, 0  ;;  %v1044_v3 = vld [vmem:[%s1204_s1 + $0x20] ss:$0 sps:$4 sm:$0xff]   ;;  %v1043_v4 = vld [vmem:[%s1204_s1 + $0x8] ss:$0 sps:$4 sm:$0xff]   ;;  %s1008_s27 = smul.u32 40, %s1213_s15  ;;  %s261_s19 = scalar_lea.vmem %s1206_s3, %s1213_s15 }
   0xe   : > { %965 = vmatpush3.bf16.msra.mxu0 %v329_v2  ;;  %1002 = vmatpush3.bf16.msra.mxu1 %v329_v2  ;;  %v545_v5 = vsel %vm327_vm0, %v1044_v3, 0  ;;  %v1046_v9 = vld [vmem:[%s1204_s1 + $0x18] sm:$0xff]   ;;  %v1045_v21 = vld [vmem:[%s1204_s1] sm:$0xff]   ;;  %v424_v22 = vsel %vm327_vm0, %v1043_v4, 0  ;;  %s914_s9 = sshll.u32 %s1213_s15, 5  ;;  %s267_s22 = scalar_lea.vmem %s1207_s4, %s1213_s15 }
   0xf   : > { %966 = vmatprep.subr.bf16.mxu0 %v1034_v1  ;;  %1001 = vmatprep.subr.bf16.mxu1 %v1034_v1  ;;  %s1139_s30 = scalar_lea.vmem %s1203_s0, %s1008_s27  ;;  %s1180_s12 = scalar_lea.vmem %s1205_s2, %s914_s9 }
  0x10   : > { %v269_v6 = vld [vmem:[%s1139_s30] sm:$0xf]  ;;  %v270_v7 = vld [vmem:[%s1139_s30 + $0x4] sm:$0xf]  ;;  %v271_v8 = vld [vmem:[%s1139_s30 + $0x8] sm:$0xf] }
  0x11   : > { %v272_v10 = vld [vmem:[%s1139_s30 + $0xc] sm:$0xf]  ;;  %v871_v11 = vcombine.low %v270_v7, %v271_v8  ;;  %v273_v12 = vld [vmem:[%s1139_s30 + $0x10] sm:$0xf]  ;;  %v274_v13 = vld [vmem:[%s1139_s30 + $0x14] sm:$0xf]  ;;  %v881_v18 = vcombine.low %v269_v6, %v270_v7 }
  0x12   : > { %967 = vmatpush3.bf16.msra.mxu0 %v1034_v1  ;;  %1003 = vmatpush3.bf16.msra.mxu1 %v1034_v1  ;;  %v275_v14 = vld [vmem:[%s1139_s30 + $0x18] sm:$0xf]  ;;  %v276_v15 = vld [vmem:[%s1139_s30 + $0x1c] sm:$0xf]  ;;  %v280_v16 = vld [vmem:[%s1139_s30 + $0x20] sm:$0xf]  ;;  %v872_v17 = vcombine.low %v272_v10, %v273_v12  ;;  %v882_v26 = vcombine.low %v271_v8, %v272_v10  ;;  %v883_v27 = vcombine.low %v273_v12, %v274_v13 }
  0x13   : > { %1006 = vmatprep.subr.msk.bf16.mxu1 %vm327_vm0, %v1043_v4  ;;  %1007 = vmatprep.subr.msk.bf16.mxu0 %vm327_vm0, %v1044_v3  ;;  %v873_v19 = vcombine.low %v274_v13, %v275_v14  ;;  %v874_v20 = vcombine.low %v276_v15, %v280_v16  ;;  %v1047_v23 = vld [vmem:[%s1139_s30 + $0x8] sm:$0xff]   ;;  %v1048_v24 = vld [vmem:[%s1139_s30 + $0x10] sm:$0xff]   ;;  %v1049_v25 = vld [vmem:[%s1139_s30 + $0x18] sm:$0xff]   ;;  %v884_v29 = vcombine.low %v275_v14, %v276_v15 }
  0x14   : > { %968 = vmatprep.mubr.msk.bf16.mxu0 %vm314_vm1, %v871_v11  ;;  %v1050_v28 = vld [vmem:[%s1139_s30 + $0x20] sm:$0xff]  }
  0x15   : > { %969 = vmatmul.mubr.msk.bf16.vlgmr.msra.gmra.mxu0 %vm314_vm1, %v872_v17  ;;  %972 = vmatprep.mubr.msk.bf16.mxu1 %vm314_vm1, %v873_v19 }
  0x16   : > { %989 = vmatpush3.bf16.msra.mxu0 %v545_v5  ;;  %973 = vmatmul.mubr.msk.bf16.vlgmr.msra.gmra.mxu1 %vm314_vm1, %v874_v20 }
  0x17   : > { %990 = vmatprep.subr.bf16.mxu0 %v1046_v9  ;;  %977 = vmatpush3.bf16.msra.mxu1 %v424_v22 }
  0x18   : > { %980 = vmatprep.mubr.msk.bf16.mxu1 %vm314_vm1, %v881_v18  ;;  %978 = vmatprep.subr.bf16.mxu1 %v1045_v21 }
  0x19   : > { %992 = vmatprep.mubr.msk.bf16.mxu0 %vm314_vm1, %v1047_v23 }
  0x1a   : > { %991 = vmatpush3.bf16.msra.mxu0 %v1046_v9 }
  0x1b   : > { %979 = vmatpush3.bf16.msra.mxu1 %v1045_v21 }
  0x1d   : > { %993 = vmatmul.mubr.msk.bf16.vlgmr.msra.gmra.mxu0 %vm314_vm1, %v1048_v24 }
  0x1e   : > { %996 = vmatprep.mubr.msk.bf16.mxu0 %vm314_vm1, %v1049_v25  ;;  %981 = vmatmul.mubr.msk.bf16.vlgmr.msra.gmra.mxu1 %vm314_vm1, %v882_v26 }
  0x1f   : > { %984 = vmatprep.mubr.msk.bf16.mxu1 %vm314_vm1, %v883_v27 }
  0x25   : > { %997 = vmatmul.mubr.msk.bf16.gmra.mxu0 %vm314_vm1, %v1050_v28 }
  0x26   : > { %985 = vmatmul.mubr.msk.bf16.gmra.mxu1 %vm314_vm1, %v884_v29 }
  0xd5   : > { %v970_v30 = vpop.f32.mrf.mxu0 }
  0xd6   : > { %v974_v31 = vpop.f32.mrf.mxu1 }
  0xd7   : > { %v365_v32 = vpop.f32.mrf.mxu0 }
  0xd8   : > { %v381_v33 = vpop.f32.mrf.mxu1 }
  0xd9   : > { %v971_v34 = vpop.f32.mrf.mxu0 }
  0xda   : > { %v975_v35 = vpop.f32.mrf.mxu1 }
  0xdb   : > { %v368_v36 = vpop.f32.mrf.mxu0 }
  0xdc   : > { %v384_v37 = vpop.f32.mrf.mxu1 }
  0xdd   : > { %v994_v38 = vpop.f32.mrf.mxu0 }
  0xde   : > { %v982_v39 = vpop.f32.mrf.mxu1 }
  0xdf   : > { %v581_v40 = vpop.f32.mrf.mxu0  ;;  %v469_v43 = vadd.f32 %v982_v39, %v970_v30 }
  0xe0   : > { %v460_v41 = vpop.f32.mrf.mxu1 }
  0xe1   : > { %v995_v42 = vpop.f32.mrf.mxu0  ;;  %v461_v44 = vadd.f32 %v460_v41, %v365_v32  ;;  %v614_v50 = vadd.f32 %v994_v38, %v469_v43 }
  0xe2   : > { %v983_v45 = vpop.f32.mrf.mxu1 }
  0xe3   : > { %v584_v46 = vpop.f32.mrf.mxu0  ;;  %v472_v47 = vadd.f32 %v983_v45, %v971_v34  ;;  %v612_v51 = vadd.f32 %v581_v40, %v461_v44  ;;  %v676_v2 = vmul.f32 %v614_v50, %v614_v50 }
  0xe4   : > { %v463_v48 = vpop.f32.mrf.mxu1 }
  0xe5   : > { %v998_v49 = vpop.f32.mrf.mxu0  ;;  %v615_v52 = vadd.f32 %v995_v42, %v472_v47  ;;  %v464_v53 = vadd.f32 %v463_v48, %v368_v36  ;;  %v674_v60 = vmul.f32 %v612_v51, %v612_v51 }
  0xe6   : > { %v986_v54 = vpop.f32.mrf.mxu1 }
  0xe7   : > { %v931_v55 = vpack.c.bf16 %v615_v52, %v614_v50  ;;  %v613_v56 = vadd.f32 %v584_v46, %v464_v53  ;;  %v597_v57 = vpop.f32.mrf.mxu0  ;;  %v485_v58 = vadd.f32 %v986_v54, %v974_v31  ;;  %v677_v7 = vmul.f32 %v615_v52, %v615_v52 }
  0xe8   : > { %v476_v59 = vpop.f32.mrf.mxu1 }
  0xe9   : > { %943 = vst [vmem:[%s1180_s12 + $0x8] sm:$0xff] %v931_v55   ;;  %v926_v61 = vpack.c.bf16 %v613_v56, %v612_v51  ;;  %v660_v62 = vadd.f32 %v613_v56, %v612_v51  ;;  %v675_v63 = vmul.f32 %v613_v56, %v613_v56  ;;  %v477_v0 = vadd.f32 %v476_v59, %v381_v33  ;;  %v999_v6 = vpop.f32.mrf.mxu0 }
  0xea   : > { %v987_v1 = vpop.f32.mrf.mxu1  ;;  %v618_v8 = vadd.f32 %v998_v49, %v485_v58 }
  0xeb   : > { %927 = vst [vmem:[%s1180_s12] sm:$0xff] %v926_v61   ;;  %v661_v3 = vadd.f32 %v660_v62, %v614_v50  ;;  %v682_v4 = vadd.f32 %v675_v63, %v674_v60  ;;  %v488_v5 = vadd.f32 %v987_v1, %v975_v35  ;;  %v616_v9 = vadd.f32 %v597_v57, %v477_v0  ;;  %v600_v19 = vpop.f32.mrf.mxu0 }
  0xec   : > { %v479_v10 = vpop.f32.mrf.mxu1  ;;  %v680_v25 = vmul.f32 %v618_v8, %v618_v8 }
  0xed   : > { %v683_v11 = vadd.f32 %v682_v4, %v676_v2  ;;  %v662_v12 = vadd.f32 %v661_v3, %v615_v52  ;;  %v619_v13 = vadd.f32 %v999_v6, %v488_v5  ;;  %v480_v14 = vadd.f32 %v479_v10, %v384_v37 }
  0xee   : > { %v678_v16 = vmul.f32 %v616_v9, %v616_v9 }
  0xef   : > { %v663_v15 = vadd.f32 %v662_v12, %v616_v9  ;;  %v684_v17 = vadd.f32 %v683_v11, %v677_v7  ;;  %v941_v18 = vpack.c.bf16 %v619_v13, %v618_v8  ;;  %v617_v20 = vadd.f32 %v600_v19, %v480_v14 }
  0xf0   : > { %v681_v28 = vmul.f32 %v619_v13, %v619_v13 }
  0xf1   : > { %v685_v21 = vadd.f32 %v684_v17, %v678_v16  ;;  %945 = vst [vmem:[%s1180_s12 + $0x18] sm:$0xff] %v941_v18   ;;  %v936_v22 = vpack.c.bf16 %v617_v20, %v616_v9  ;;  %v664_v23 = vadd.f32 %v663_v15, %v617_v20  ;;  %v679_v24 = vmul.f32 %v617_v20, %v617_v20 }
  0xf3   : > { %944 = vst [vmem:[%s1180_s12 + $0x10] sm:$0xff] %v936_v22   ;;  %v665_v26 = vadd.f32 %v664_v23, %v618_v8  ;;  %v686_v27 = vadd.f32 %v685_v21, %v679_v24 }
  0xf5   : > { %v666_v29 = vadd.f32 %v665_v26, %v619_v13  ;;  %v687_v30 = vadd.f32 %v686_v27, %v680_v25 }
  0xf7   : > { %v667_v31 = vrot.slane %v666_v29, 4  ;;  %v688_v32 = vadd.f32 %v687_v30, %v681_v28 }
  0xf9   : > { %v668_v33 = vadd.f32 %v667_v31, %v666_v29  ;;  %v689_v34 = vrot.slane %v688_v32, 4 }
  0xfb   : > { %v669_v35 = vrot.slane %v668_v33, 2  ;;  %v690_v36 = vadd.f32 %v689_v34, %v688_v32 }
  0xfd   : > { %v670_v37 = vadd.f32 %v669_v35, %v668_v33  ;;  %v691_v38 = vrot.slane %v690_v36, 2 }
  0xff   : > { %v671_v39 = vrot.slane %v670_v37, 1  ;;  %v692_v40 = vadd.f32 %v691_v38, %v690_v36 }
 0x101   : > { %v672_v41 = vadd.f32 %v671_v39, %v670_v37  ;;  %v693_v42 = vrot.slane %v692_v40, 1 }
 0x103   : > { %673 = vst [vmem:[%s261_s19] sm:$0x1] %v672_v41  ;;  %v694_v43 = vadd.f32 %v693_v42, %v692_v40 }
 0x105   : > { %695 = vst [vmem:[%s267_s22] sm:$0x1] %v694_v43 }
 0x106 PF: > { %s15_s17 = sadd.s32 1, %s1073_s17   ;;  %s1208_s15 = smov %s1069_s16 }
 0x107   : > { %p12_p5 = scmp.ge.s32.totalorder %s15_s17, 4   ;;  %s1209_s16 = smov %s1211_s18 }
 0x109   :  { %14 = sbr.rel (!%p12_p5) target bundleno = 2 (0x2), region = 87 }

// kernel: basic_block_forward.8
= control target key start
LH: loop header
LB: loop body
LE: loop exit
PB: predicated region body
PF: predicated region fallthrough
CT: control target
= control target key end

     0   :  { %s776_s15 = smov 0   ;;  %s778_s16 = smov 0   ;;  %s823_s0 = inlined_call_operand.vmem [shape: bf16[2,1,64,4], index: 0, kind: input, shape index: {}]   ;;  %s824_s1 = inlined_call_operand.vmem [shape: bf16[1,4,128], index: 1, kind: input, shape index: {}]   ;;  %s825_s2 = inlined_call_operand.vmem [shape: bf16[2,64,128], index: 2, kind: output, shape index: {0}]   ;;  %s826_s3 = inlined_call_operand.vmem [shape: f32[2,1,128], index: 3, kind: output, shape index: {1}]   ;;  %s827_s4 = inlined_call_operand.vmem [shape: f32[2,1,128], index: 4, kind: output, shape index: {2}]  }
   0x1   :  { %s780_s17 = smov 0  }
   0x2 LB: > { %s27_s18 = sadd.s32 1, %s745_s16  ;;  %p624_p0 = scmp.ge.s32.totalorder %s749_s17, 1  ;;  %s749_s17 = sphi %s780_s17, %s15_s17   ;;  %s745_s16 = sphi %s778_s16, %s829_s16   ;;  %s741_s15 = sphi %s776_s15, %s828_s15  }
   0x3   : > { %p29_p1 = scmp.ge.s32.totalorder %s27_s18, 2  ;;  %p194_p2 = scmp.lt.s32.totalorder %s749_s17, 3 }
   0x5   : > { %s831_s18 = smov (%p29_p1, %s27_s18), 0  ;;  %p195_p3 = pnand %p624_p0, %p194_p2 }
   0x6   : > { %p239_p4 = scmp.lt.s32.totalorder (!%p195_p3), %s741_s15, 1 }
   0x7   : > { %198 = sbr.rel (%p195_p3) target bundleno = 245 (0xf5), region = 28 }
   0xc   : > { %v277_v0 = vld [vmem:[%s824_s1] sm:$0x3]  ;;  %vm311_vm0 = vcmask 1041408   ;;  %s833_s15 = smov (!%p239_p4, %s741_s15), 1  ;;  %vm298_vm1 = vcmask 31744  }
   0xd   : > { %697 = vmatprep.subr.msk.bf16.mxu0 %vm311_vm0, %v277_v0  ;;  %v313_v1 = vsel %vm311_vm0, %v277_v0, 0  ;;  %698 = vmatprep.subr.msk.bf16.mxu1 %vm311_vm0, %v277_v0  ;;  %s647_s21 = sshll.u32 %s833_s15, 5  ;;  %s261_s30 = scalar_lea.vmem %s826_s3, %s833_s15 }
   0xe   : > { %686 = vmatpush3.bf16.msra.mxu0 %v313_v1  ;;  %696 = vmatpush3.bf16.msra.mxu1 %v313_v1  ;;  %s243_s24 = scalar_lea.vmem %s823_s0, %s647_s21  ;;  %s255_s27 = scalar_lea.vmem %s825_s2, %s647_s21 }
   0xf   : > { %v723_v2 = vld [vmem:[%s243_s24] sm:$0xff]   ;;  %v724_v3 = vld [vmem:[%s243_s24 + $0x8] sm:$0xff]   ;;  %v725_v4 = vld [vmem:[%s243_s24 + $0x10] sm:$0xff]   ;;  %s267_s7 = scalar_lea.vmem %s827_s4, %s833_s15 }
  0x10   : > { %687 = vmatprep.mubr.msk.bf16.mxu0 %vm298_vm1, %v723_v2  ;;  %v726_v5 = vld [vmem:[%s243_s24 + $0x18] sm:$0xff]   ;;  %691 = vmatprep.mubr.msk.bf16.mxu1 %vm298_vm1, %v725_v4 }
  0x11   : > { %688 = vmatmul.mubr.msk.bf16.vlgmr.msra.gmra.mxu0 %vm298_vm1, %v724_v3  ;;  %692 = vmatmul.mubr.msk.bf16.vlgmr.msra.gmra.mxu1 %vm298_vm1, %v726_v5 }
  0xd1   : > { %v689_v6 = vpop.f32.mrf.mxu0  ;;  %v693_v8 = vpop.f32.mrf.mxu1 }
  0xd2   : > { %v436_v20 = vmul.f32 %v689_v6, %v689_v6  ;;  %v440_v33 = vmul.f32 %v693_v8, %v693_v8 }
  0xd3   : > { %v349_v7 = vpop.f32.mrf.mxu0  ;;  %v365_v10 = vpop.f32.mrf.mxu1 }
  0xd4   : > { %v434_v12 = vmul.f32 %v349_v7, %v349_v7  ;;  %v438_v27 = vmul.f32 %v365_v10, %v365_v10 }
  0xd5   : > { %v690_v9 = vpop.f32.mrf.mxu0  ;;  %v694_v14 = vpop.f32.mrf.mxu1 }
  0xd6   : > { %v665_v11 = vpack.c.bf16 %v690_v9, %v689_v6  ;;  %v675_v18 = vpack.c.bf16 %v694_v14, %v693_v8  ;;  %v437_v24 = vmul.f32 %v690_v9, %v690_v9  ;;  %v441_v36 = vmul.f32 %v694_v14, %v694_v14 }
  0xd7   : > { %v352_v13 = vpop.f32.mrf.mxu0  ;;  %v368_v19 = vpop.f32.mrf.mxu1 }
  0xd8   : > { %677 = vst [vmem:[%s255_s27 + $0x8] sm:$0xff] %v665_v11   ;;  %v660_v15 = vpack.c.bf16 %v352_v13, %v349_v7  ;;  %v420_v16 = vadd.f32 %v352_v13, %v349_v7  ;;  %v435_v17 = vmul.f32 %v352_v13, %v352_v13  ;;  %679 = vst [vmem:[%s255_s27 + $0x18] sm:$0xff] %v675_v18  }
  0xd9   : > { %v670_v23 = vpack.c.bf16 %v368_v19, %v365_v10  ;;  %v439_v31 = vmul.f32 %v368_v19, %v368_v19 }
  0xda   : > { %661 = vst [vmem:[%s255_s27] sm:$0xff] %v660_v15   ;;  %v421_v21 = vadd.f32 %v689_v6, %v420_v16  ;;  %v442_v22 = vadd.f32 %v435_v17, %v434_v12 }
  0xdb   : > { %678 = vst [vmem:[%s255_s27 + $0x10] sm:$0xff] %v670_v23  }
  0xdc   : > { %v443_v25 = vadd.f32 %v442_v22, %v436_v20  ;;  %v422_v26 = vadd.f32 %v690_v9, %v421_v21 }
  0xde   : > { %v423_v28 = vadd.f32 %v422_v26, %v365_v10  ;;  %v444_v29 = vadd.f32 %v443_v25, %v437_v24 }
  0xe0   : > { %v424_v30 = vadd.f32 %v423_v28, %v368_v19  ;;  %v445_v32 = vadd.f32 %v444_v29, %v438_v27 }
  0xe2   : > { %v425_v34 = vadd.f32 %v693_v8, %v424_v30  ;;  %v446_v35 = vadd.f32 %v445_v32, %v439_v31 }
  0xe4   : > { %v426_v37 = vadd.f32 %v694_v14, %v425_v34  ;;  %v447_v38 = vadd.f32 %v446_v35, %v440_v33 }
  0xe6   : > { %v427_v39 = vrot.slane %v426_v37, 4  ;;  %v448_v40 = vadd.f32 %v447_v38, %v441_v36 }
  0xe8   : > { %v428_v41 = vadd.f32 %v427_v39, %v426_v37  ;;  %v449_v42 = vrot.slane %v448_v40, 4 }
  0xea   : > { %v429_v43 = vrot.slane %v428_v41, 2  ;;  %v450_v44 = vadd.f32 %v449_v42, %v448_v40 }
  0xec   : > { %v430_v45 = vadd.f32 %v429_v43, %v428_v41  ;;  %v451_v46 = vrot.slane %v450_v44, 2 }
  0xee   : > { %v431_v47 = vrot.slane %v430_v45, 1  ;;  %v452_v48 = vadd.f32 %v451_v46, %v450_v44 }
  0xf0   : > { %v432_v49 = vadd.f32 %v431_v47, %v430_v45  ;;  %v453_v50 = vrot.slane %v452_v48, 1 }
  0xf2   : > { %433 = vst [vmem:[%s261_s30] sm:$0x1] %v432_v49  ;;  %v454_v51 = vadd.f32 %v453_v50, %v452_v48 }
  0xf4   : > { %455 = vst [vmem:[%s267_s7] sm:$0x1] %v454_v51 }
  0xf5 PF: > { %s15_s17 = sadd.s32 1, %s749_s17   ;;  %s828_s15 = smov %s745_s16 }
  0xf6   : > { %p12_p5 = scmp.ge.s32.totalorder %s15_s17, 4   ;;  %s829_s16 = smov %s831_s18 }
  0xf8   :  { %14 = sbr.rel (!%p12_p5) target bundleno = 2 (0x2), region = 85 }

</bundles_post_ra>
